<compile_context>
chip_gen: v6e
topology: v6e:2x2x1
jax: 0.10.0
libtpu: 0.0.40
codegen_flags: <defaults>
</compile_context>

<pallas_src>
import jax
import jax.numpy as jnp
from jax.experimental import pallas as pl
from jax.experimental.pallas import tpu as pltpu


def _lstm_classifier_kernel(x_ref, len_ref, xlast_ref,
                            w_ih_f_ref, w_hh_f_ref, b_f_ref,
                            w_ih_b_ref, b_b_ref,
                            w_out_f_ref, w_out_b_ref, b_out_ref,
                            y_ref, h_scr, c_scr):
    CT, BT, E = x_ref.shape                  # time chunk, batch tile, embed
    Hp = w_hh_f_ref.shape[0]                 # padded per-direction hidden
    tc = pl.program_id(1)                    # time-chunk index ("arbitrary")

    @pl.when(tc == 0)
    def _():                                 # fresh batch tile: zero carries
        h_scr[...] = jnp.zeros_like(h_scr)
        c_scr[...] = jnp.zeros_like(c_scr)

    def gate_math(gates, c):
        # gate layout [ i | f | o | g ], one 128-lane-aligned Hp slab each:
        # the three sigmoids are a single contiguous (BT, 3*Hp) EUP stream.
        ifo = jax.nn.sigmoid(gates[:, :3 * Hp])
        g = jnp.tanh(gates[:, 3 * Hp:])
        i = ifo[:, :Hp]
        f = ifo[:, Hp:2 * Hp]
        o = ifo[:, 2 * Hp:3 * Hp]
        c_new = f * c + i * g
        h_new = o * jnp.tanh(c_new)
        return h_new, c_new

    # Hoisted input projection for this time chunk: one bf16 MXU matmul for
    # all CT timesteps of this batch tile, f32 accumulation.
    x = x_ref[...].reshape(CT * BT, E)                       # bf16, tile-clean
    xg = jnp.dot(x, w_ih_f_ref[...], preferred_element_type=jnp.float32)

    lengths = len_ref[...]                                   # (BT, 1) int32
    bias = b_f_ref[...]                                      # (1, 4*Hp) f32
    w_hh = w_hh_f_ref[...]                                   # (Hp, 4*Hp) bf16

    h = h_scr[...]
    c = c_scr[...]
    t0 = tc * CT                                             # global t of slice 0
    for t in range(CT):                                      # CT small & static
        gates = (xg[t * BT:(t + 1) * BT, :]
                 + jnp.dot(h.astype(jnp.bfloat16), w_hh,
                           preferred_element_type=jnp.float32)
                 + bias)                                     # bias folded per step
        h_new, c_new = gate_math(gates, c)
        active = (t0 + t) < lengths                          # pack_padded freeze
        h = jnp.where(active, h_new, h)
        c = jnp.where(active, c_new, c)
    h_scr[...] = h
    c_scr[...] = c

    @pl.when(tc == pl.num_programs(1) - 1)
    def _():
        # Backward direction at t = length-1: one cell step from zero state
        # (its W_hh term vanishes because h0 == 0).
        gates_b = (jnp.dot(xlast_ref[...], w_ih_b_ref[...],
                           preferred_element_type=jnp.float32)
                   + b_b_ref[...])
        h_bwd, _ = gate_math(gates_b, jnp.zeros((BT, Hp), jnp.float32))
        # hidden2label on concat([h_fwd, h_bwd], -1) as two split matmuls.
        # TODO(synk): training-mode nn.Dropout(0.5) stochastic mask omitted
        # (eval-mode identity).
        y_ref[...] = (
            jnp.dot(h.astype(jnp.bfloat16), w_out_f_ref[...],
                    preferred_element_type=jnp.float32)
            + jnp.dot(h_bwd.astype(jnp.bfloat16), w_out_b_ref[...],
                      preferred_element_type=jnp.float32)
            + b_out_ref[...])


def _round_up(n, m):
    return ((n + m - 1) // m) * m


def lstm_classifier_forward(sentence, lengths, params, *,
                            batch_tile=None, time_chunk=None):
    """sentence: (B, T, E) float32 batch_first (pre-embedded tokens).
    lengths: (B,) int32, 1 <= length <= T (pack_padded_sequence contract).
    Returns logits (B, label_size)."""
    B, T, E = sentence.shape
    H2 = params["w_hh_f"].shape[1]          # per-direction hidden (w_hh: (4H,H))
    L = params["w_out"].shape[0]

    # Tiling: batch tile feeds the MXU height; time chunk bounds VMEM.
    # (On v7x halve these if VMEM-pressured: 64 MiB physical / ~32 MiB scoped.)
    BT = batch_tile if batch_tile is not None else min(128, _round_up(B, 16))
    BT = _round_up(BT, 16)                  # 16: clean bf16 sublane tiling
    Bp = _round_up(B, BT)
    CT = time_chunk if time_chunk is not None else min(16, T)
    Tp = _round_up(T, CT)
    Hp = _round_up(max(H2, 128), 128)       # one 128-lane slab per gate
    Lp = _round_up(max(L, 128), 128)        # lane-dense output store
    nb, ntc = Bp // BT, Tp // CT

    f32, bf16 = jnp.float32, jnp.bfloat16
    # kernel gate slot -> PyTorch gate index (PyTorch order i,f,g,o; kernel
    # order i,f,o,g so the sigmoids act on one contiguous slab).
    gate_order = (0, 1, 3, 2)

    def pad_gate_cols(w_t, rows_pad):
        # w_t: (in_dim, 4*H2) -> (rows_pad, 4*Hp) bf16.  Zero padding keeps
        # padded hidden lanes exactly zero through the whole recurrence.
        in_dim = w_t.shape[0]
        out = jnp.zeros((rows_pad, 4 * Hp), f32)
        for slot, k in enumerate(gate_order):
            out = out.at[:in_dim, slot * Hp:slot * Hp + H2].set(
                w_t[:, k * H2:(k + 1) * H2].astype(f32))
        return out.astype(bf16)

    def pad_gate_bias(b):
        out = jnp.zeros((1, 4 * Hp), f32)
        for slot, k in enumerate(gate_order):
            out = out.at[:, slot * Hp:slot * Hp + H2].set(
                b[k * H2:(k + 1) * H2].astype(f32).reshape(1, H2))
        return out                            # f32: gate math stays f32

    # Forward-direction LSTM weights, pre-transposed to (in, out), bf16.
    w_ih_f = pad_gate_cols(params["w_ih_f"].T, E)            # (E, 4*Hp)
    w_hh_f = pad_gate_cols(params["w_hh_f"].T, Hp)           # (Hp, 4*Hp)
    b_f = pad_gate_bias(params["b_ih_f"] + params["b_hh_f"])
    # Backward direction: only the input projection is needed (zero h0/c0).
    w_ih_b = pad_gate_cols(params["w_ih_b"].T, E)
    b_b = pad_gate_bias(params["b_ih_b"] + params["b_hh_b"])

    # hidden2label split into forward/backward halves, (Hp, Lp) bf16.
    w_out_t = params["w_out"].T.astype(f32)                   # (2*H2, L)
    w_out_f = jnp.zeros((Hp, Lp), f32).at[:H2, :L].set(w_out_t[:H2]).astype(bf16)
    w_out_b = jnp.zeros((Hp, Lp), f32).at[:H2, :L].set(w_out_t[H2:]).astype(bf16)
    b_out = jnp.zeros((1, Lp), f32).at[0, :L].set(params["b_out"].astype(f32))

    # x: (B,T,E) -> time-major (Tp, Bp, E) bf16, streamed per (chunk, tile).
    x = jnp.transpose(sentence.astype(f32), (1, 0, 2))        # (T, B, E)
    x = jnp.pad(x, ((0, Tp - T), (0, Bp - B), (0, 0))).astype(bf16)

    # x[:, length-1, :] gathered with XLA in the wrapper (off the kernel).
    lengths = lengths.astype(jnp.int32)
    idx = jnp.broadcast_to(jnp.clip(lengths - 1, 0, T - 1)[:, None, None],
                           (B, 1, E))
    x_last = jnp.take_along_axis(sentence.astype(f32), idx, axis=1)[:, 0, :]
    x_last = jnp.pad(x_last, ((0, Bp - B), (0, 0))).astype(bf16)

    len_pad = jnp.pad(lengths, (0, Bp - B), constant_values=1).reshape(Bp, 1)

    grid_spec = pltpu.PrefetchScalarGridSpec(
        num_scalar_prefetch=0,
        grid=(nb, ntc),                      # (batch tiles, time chunks)
        in_specs=[
            pl.BlockSpec((CT, BT, E), lambda bi, tc: (tc, bi, 0)),   # x
            pl.BlockSpec((BT, 1), lambda bi, tc: (bi, 0)),           # lengths
            pl.BlockSpec((BT, E), lambda bi, tc: (bi, 0)),           # x_last
            pl.BlockSpec((E, 4 * Hp), lambda bi, tc: (0, 0)),        # w_ih_f
            pl.BlockSpec((Hp, 4 * Hp), lambda bi, tc: (0, 0)),       # w_hh_f
            pl.BlockSpec((1, 4 * Hp), lambda bi, tc: (0, 0)),        # b_f
            pl.BlockSpec((E, 4 * Hp), lambda bi, tc: (0, 0)),        # w_ih_b
            pl.BlockSpec((1, 4 * Hp), lambda bi, tc: (0, 0)),        # b_b
            pl.BlockSpec((Hp, Lp), lambda bi, tc: (0, 0)),           # w_out_f
            pl.BlockSpec((Hp, Lp), lambda bi, tc: (0, 0)),           # w_out_b
            pl.BlockSpec((1, Lp), lambda bi, tc: (0, 0)),            # b_out
        ],
        out_specs=pl.BlockSpec((BT, Lp), lambda bi, tc: (bi, 0)),
        scratch_shapes=[pltpu.VMEM((BT, Hp), jnp.float32),           # h carry
                        pltpu.VMEM((BT, Hp), jnp.float32)],          # c carry
    )
    y_pad = pl.pallas_call(
        _lstm_classifier_kernel,
        out_shape=jax.ShapeDtypeStruct((Bp, Lp), jnp.float32),
        grid_spec=grid_spec,
        compiler_params=pltpu.CompilerParams(
            dimension_semantics=("parallel", "arbitrary"),
            vmem_limit_bytes=32 * 1024 * 1024),
    )(x, len_pad, x_last, w_ih_f, w_hh_f, b_f, w_ih_b, b_b,
      w_out_f, w_out_b, b_out)
    return y_pad[:B, :L]


def _reference_forward(sentence, lengths, params):
    """Pure-JAX f32 reference with identical packed-bi-LSTM semantics."""
    B, T, E = sentence.shape
    H2 = params["w_hh_f"].shape[1]

    def cell(x_t, h, c, w_ih, w_hh, b):
        z = x_t @ w_ih.T + h @ w_hh.T + b     # PyTorch gate order i, f, g, o
        i = jax.nn.sigmoid(z[:, :H2])
        f = jax.nn.sigmoid(z[:, H2:2 * H2])
        g = jnp.tanh(z[:, 2 * H2:3 * H2])
        o = jax.nn.sigmoid(z[:, 3 * H2:])
        c_new = f * c + i * g
        return o * jnp.tanh(c_new), c_new

    h = jnp.zeros((B, H2), jnp.float32)
    c = jnp.zeros((B, H2), jnp.float32)
    b_fwd = params["b_ih_f"] + params["b_hh_f"]
    for t in range(T):
        h_new, c_new = cell(sentence[:, t], h, c,
                            params["w_ih_f"], params["w_hh_f"], b_fwd)
        active = (t < lengths)[:, None]
        h = jnp.where(active, h_new, h)
        c = jnp.where(active, c_new, c)
    idx = jnp.broadcast_to((lengths - 1)[:, None, None], (B, 1, E))
    x_last = jnp.take_along_axis(sentence, idx, axis=1)[:, 0, :]
    h_b, _ = cell(x_last, jnp.zeros((B, H2), jnp.float32),
                  jnp.zeros((B, H2), jnp.float32),
                  params["w_ih_b"], params["w_hh_b"],
                  params["b_ih_b"] + params["b_hh_b"])
    last = jnp.concatenate([h, h_b], axis=-1)
    return last @ params["w_out"].T + params["b_out"]


if __name__ == "__main__":
    # Module hyper-params (small, consistent with the forward pass).
    embedding_dim = 16
    hidden_dim = 32          # per-direction hidden = 16
    vocab_size = 100         # nn.Embedding unused in forward (input pre-embedded)
    label_size = 4
    batch_size = 2
    seq_len = 8
    H2 = hidden_dim // 2

    key = jax.random.PRNGKey(0)
    keys = jax.random.split(key, 12)
    k_lstm = 1.0 / (H2 ** 0.5)             # PyTorch LSTM init U(-1/sqrt(H), 1/sqrt(H))
    k_lin = 1.0 / (hidden_dim ** 0.5)      # PyTorch Linear init

    def unif(k, shape, scale):
        return jax.random.uniform(k, shape, jnp.float32, -scale, scale)

    params = dict(
        # forward direction
        w_ih_f=unif(keys[0], (4 * H2, embedding_dim), k_lstm),
        w_hh_f=unif(keys[1], (4 * H2, H2), k_lstm),
        b_ih_f=unif(keys[2], (4 * H2,), k_lstm),
        b_hh_f=unif(keys[3], (4 * H2,), k_lstm),
        # backward direction (w_hh_b kept for parameter parity; unused since
        # the backward state starts from the zero initial state)
        w_ih_b=unif(keys[4], (4 * H2, embedding_dim), k_lstm),
        w_hh_b=unif(keys[5], (4 * H2, H2), k_lstm),
        b_ih_b=unif(keys[6], (4 * H2,), k_lstm),
        b_hh_b=unif(keys[7], (4 * H2,), k_lstm),
        # hidden2label
        w_out=unif(keys[8], (label_size, hidden_dim), k_lin),
        b_out=unif(keys[9], (label_size,), k_lin),
    )

    sentence = jax.random.normal(
        keys[10], (batch_size, seq_len, embedding_dim), jnp.float32)
    lengths = jnp.array([8, 5], dtype=jnp.int32)   # sorted descending (pack contract)

    y = lstm_classifier_forward(sentence, lengths, params)
    jax.block_until_ready(y)
    assert y.shape == (batch_size, label_size)

    y_ref = _reference_forward(sentence, lengths, params)
    max_err = float(jnp.max(jnp.abs(y - y_ref)))
    assert max_err < 5e-2, f"kernel vs reference mismatch: {max_err}"

    print("KERNEL_OK")
</pallas_src>

<mosaic_0001>
module attributes {stable_mosaic.version = 11 : i64} {
  func.func @_lstm_classifier_kernel(%arg0: i32, %arg1: i32, %arg2: memref<8x16x16xbf16, #tpu.memory_space<vmem>>, %arg3: memref<16x1xi32, #tpu.memory_space<vmem>>, %arg4: memref<16x16xbf16, #tpu.memory_space<vmem>>, %arg5: memref<16x512xbf16, #tpu.memory_space<vmem>>, %arg6: memref<128x512xbf16, #tpu.memory_space<vmem>>, %arg7: memref<1x512xf32, #tpu.memory_space<vmem>>, %arg8: memref<16x512xbf16, #tpu.memory_space<vmem>>, %arg9: memref<1x512xf32, #tpu.memory_space<vmem>>, %arg10: memref<128x128xbf16, #tpu.memory_space<vmem>>, %arg11: memref<128x128xbf16, #tpu.memory_space<vmem>>, %arg12: memref<1x128xf32, #tpu.memory_space<vmem>>, %arg13: memref<16x128xf32, #tpu.memory_space<vmem>>, %arg14: memref<16x128xf32, #tpu.memory_space<vmem>>, %arg15: memref<16x128xf32, #tpu.memory_space<vmem>>) attributes {dimension_semantics = [#tpu.dimension_semantics<parallel>, #tpu.dimension_semantics<arbitrary>], iteration_bounds = array<i64: 1, 1>, scalar_prefetch = 0 : i64, scratch_operands = 2 : i64, tpu.core_type = #tpu.core_type<tc>, window_params = [{transform_indices = @transform_0, window_bounds = array<i64: 8, 16, 16>}, {transform_indices = @transform_1, window_bounds = array<i64: 16, 1>}, {transform_indices = @transform_2, window_bounds = array<i64: 16, 16>}, {pipeline_mode = #tpu.pipeline_mode<synchronous>, transform_indices = @transform_3, window_bounds = array<i64: 16, 512>}, {pipeline_mode = #tpu.pipeline_mode<synchronous>, transform_indices = @transform_4, window_bounds = array<i64: 128, 512>}, {pipeline_mode = #tpu.pipeline_mode<synchronous>, transform_indices = @transform_5, window_bounds = array<i64: 1, 512>}, {pipeline_mode = #tpu.pipeline_mode<synchronous>, transform_indices = @transform_6, window_bounds = array<i64: 16, 512>}, {pipeline_mode = #tpu.pipeline_mode<synchronous>, transform_indices = @transform_7, window_bounds = array<i64: 1, 512>}, {pipeline_mode = #tpu.pipeline_mode<synchronous>, transform_indices = @transform_8, window_bounds = array<i64: 128, 128>}, {pipeline_mode = #tpu.pipeline_mode<synchronous>, transform_indices = @transform_9, window_bounds = array<i64: 128, 128>}, {pipeline_mode = #tpu.pipeline_mode<synchronous>, transform_indices = @transform_10, window_bounds = array<i64: 1, 128>}, {transform_indices = @transform_11, window_bounds = array<i64: 16, 128>}]} {
    %c0_i32 = arith.constant 0 : i32
    %0 = arith.cmpi eq, %arg1, %c0_i32 : i32
    %1 = arith.extui %0 : i1 to i32
    %c0_i32_0 = arith.constant 0 : i32
    %2 = arith.cmpi ne, %1, %c0_i32_0 : i32
    scf.if %2 {
      %cst_38 = arith.constant 0.000000e+00 : f32
      %266 = vector.broadcast %cst_38 : f32 to vector<16x128xf32>
      %c0_39 = arith.constant 0 : index
      %c0_40 = arith.constant 0 : index
      %267 = vector.load %arg14[%c0_39, %c0_40] : memref<16x128xf32, #tpu.memory_space<vmem>>, vector<16x128xf32>
      tpu.vector_store %arg14[%c0_39, %c0_40], %266 {strides = array<i32>} : memref<16x128xf32, #tpu.memory_space<vmem>>, vector<16x128xf32>,
      %cst_41 = arith.constant 0.000000e+00 : f32
      %268 = vector.broadcast %cst_41 : f32 to vector<16x128xf32>
      %c0_42 = arith.constant 0 : index
      %c0_43 = arith.constant 0 : index
      %269 = vector.load %arg15[%c0_42, %c0_43] : memref<16x128xf32, #tpu.memory_space<vmem>>, vector<16x128xf32>
      tpu.vector_store %arg15[%c0_42, %c0_43], %268 {strides = array<i32>} : memref<16x128xf32, #tpu.memory_space<vmem>>, vector<16x128xf32>,
    } else {
    }
    %c0 = arith.constant 0 : index
    %c0_1 = arith.constant 0 : index
    %c0_2 = arith.constant 0 : index
    %3 = vector.load %arg2[%c0, %c0_1, %c0_2] : memref<8x16x16xbf16, #tpu.memory_space<vmem>>, vector<8x16x16xbf16>
    %4 = vector.shape_cast %3 : vector<8x16x16xbf16> to vector<128x16xbf16>
    %c0_3 = arith.constant 0 : index
    %c0_4 = arith.constant 0 : index
    %5 = vector.load %arg5[%c0_3, %c0_4] : memref<16x512xbf16, #tpu.memory_space<vmem>>, vector<16x512xbf16>
    %cst = arith.constant dense<0.000000e+00> : vector<128x512xf32>
    %6 = tpu.matmul %4, %5, %cst {dimension_numbers = #tpu.dot_dimension_numbers<[1], [0], [0], [1], [0, 0, 1, 1], [], []>} : vector<128x16xbf16>, vector<16x512xbf16>, vector<128x512xf32> -> vector<128x512xf32>
    %c0_5 = arith.constant 0 : index
    %c0_6 = arith.constant 0 : index
    %7 = vector.load %arg3[%c0_5, %c0_6] : memref<16x1xi32, #tpu.memory_space<vmem>>, vector<16x1xi32>
    %c0_7 = arith.constant 0 : index
    %c0_8 = arith.constant 0 : index
    %8 = vector.load %arg7[%c0_7, %c0_8] : memref<1x512xf32, #tpu.memory_space<vmem>>, vector<1x512xf32>
    %c0_9 = arith.constant 0 : index
    %c0_10 = arith.constant 0 : index
    %9 = vector.load %arg6[%c0_9, %c0_10] : memref<128x512xbf16, #tpu.memory_space<vmem>>, vector<128x512xbf16>
    %c0_11 = arith.constant 0 : index
    %c0_12 = arith.constant 0 : index
    %10 = vector.load %arg14[%c0_11, %c0_12] : memref<16x128xf32, #tpu.memory_space<vmem>>, vector<16x128xf32>
    %c0_13 = arith.constant 0 : index
    %c0_14 = arith.constant 0 : index
    %11 = vector.load %arg15[%c0_13, %c0_14] : memref<16x128xf32, #tpu.memory_space<vmem>>, vector<16x128xf32>
    %c8_i32 = arith.constant 8 : i32
    %12 = arith.muli %arg1, %c8_i32 : i32
    %13 = vector.extract_strided_slice %6 {offsets = [0, 0], sizes = [16, 512], strides = [1, 1]} : vector<128x512xf32> to vector<16x512xf32>
    %14 = arith.truncf %10 : vector<16x128xf32> to vector<16x128xbf16>
    %cst_15 = arith.constant dense<0.000000e+00> : vector<16x512xf32>
    %15 = tpu.matmul %14, %9, %cst_15 {dimension_numbers = #tpu.dot_dimension_numbers<[1], [0], [0], [1], [0, 0, 1, 1], [], []>} : vector<16x128xbf16>, vector<128x512xbf16>, vector<16x512xf32> -> vector<16x512xf32>
    %16 = arith.addf %13, %15 : vector<16x512xf32>
    %17 = vector.broadcast %8 : vector<1x512xf32> to vector<16x512xf32>
    %18 = arith.addf %16, %17 : vector<16x512xf32>
    %19 = vector.extract_strided_slice %18 {offsets = [0, 0], sizes = [16, 384], strides = [1, 1]} : vector<16x512xf32> to vector<16x384xf32>
    %20 = arith.negf %19 : vector<16x384xf32>
    %21 = math.exp %20 : vector<16x384xf32>
    %cst_16 = arith.constant 1.000000e+00 : f32
    %22 = vector.broadcast %cst_16 : f32 to vector<16x384xf32>
    %23 = arith.addf %22, %21 : vector<16x384xf32>
    %24 = arith.divf %22, %23 : vector<16x384xf32>
    %25 = vector.extract_strided_slice %18 {offsets = [0, 384], sizes = [16, 128], strides = [1, 1]} : vector<16x512xf32> to vector<16x128xf32>
    %26 = math.tanh %25 : vector<16x128xf32>
    %27 = vector.extract_strided_slice %24 {offsets = [0, 0], sizes = [16, 128], strides = [1, 1]} : vector<16x384xf32> to vector<16x128xf32>
    %28 = vector.extract_strided_slice %24 {offsets = [0, 128], sizes = [16, 128], strides = [1, 1]} : vector<16x384xf32> to vector<16x128xf32>
    %29 = vector.extract_strided_slice %24 {offsets = [0, 256], sizes = [16, 128], strides = [1, 1]} : vector<16x384xf32> to vector<16x128xf32>
    %30 = arith.mulf %28, %11 : vector<16x128xf32>
    %31 = arith.mulf %27, %26 : vector<16x128xf32>
    %32 = arith.addf %30, %31 : vector<16x128xf32>
    %33 = math.tanh %32 : vector<16x128xf32>
    %34 = arith.mulf %29, %33 : vector<16x128xf32>
    %c0_i32_17 = arith.constant 0 : i32
    %35 = arith.addi %12, %c0_i32_17 : i32
    %36 = vector.broadcast %35 : i32 to vector<16x1xi32>
    %37 = arith.cmpi slt, %36, %7 : vector<16x1xi32>
    %38 = vector.shape_cast %37 : vector<16x1xi1> to vector<16x1xi1>
    %39 = vector.broadcast %38 : vector<16x1xi1> to vector<16x128xi1>
    %40 = arith.select %39, %34, %10 : vector<16x128xi1>, vector<16x128xf32>
    %41 = vector.shape_cast %37 : vector<16x1xi1> to vector<16x1xi1>
    %42 = vector.broadcast %41 : vector<16x1xi1> to vector<16x128xi1>
    %43 = arith.select %42, %32, %11 : vector<16x128xi1>, vector<16x128xf32>
    %44 = vector.extract_strided_slice %6 {offsets = [16, 0], sizes = [16, 512], strides = [1, 1]} : vector<128x512xf32> to vector<16x512xf32>
    %45 = arith.truncf %40 : vector<16x128xf32> to vector<16x128xbf16>
    %cst_18 = arith.constant dense<0.000000e+00> : vector<16x512xf32>
    %46 = tpu.matmul %45, %9, %cst_18 {dimension_numbers = #tpu.dot_dimension_numbers<[1], [0], [0], [1], [0, 0, 1, 1], [], []>} : vector<16x128xbf16>, vector<128x512xbf16>, vector<16x512xf32> -> vector<16x512xf32>
    %47 = arith.addf %44, %46 : vector<16x512xf32>
    %48 = vector.broadcast %8 : vector<1x512xf32> to vector<16x512xf32>
    %49 = arith.addf %47, %48 : vector<16x512xf32>
    %50 = vector.extract_strided_slice %49 {offsets = [0, 0], sizes = [16, 384], strides = [1, 1]} : vector<16x512xf32> to vector<16x384xf32>
    %51 = arith.negf %50 : vector<16x384xf32>
    %52 = math.exp %51 : vector<16x384xf32>
    %cst_19 = arith.constant 1.000000e+00 : f32
    %53 = vector.broadcast %cst_19 : f32 to vector<16x384xf32>
    %54 = arith.addf %53, %52 : vector<16x384xf32>
    %55 = arith.divf %53, %54 : vector<16x384xf32>
    %56 = vector.extract_strided_slice %49 {offsets = [0, 384], sizes = [16, 128], strides = [1, 1]} : vector<16x512xf32> to vector<16x128xf32>
    %57 = math.tanh %56 : vector<16x128xf32>
    %58 = vector.extract_strided_slice %55 {offsets = [0, 0], sizes = [16, 128], strides = [1, 1]} : vector<16x384xf32> to vector<16x128xf32>
    %59 = vector.extract_strided_slice %55 {offsets = [0, 128], sizes = [16, 128], strides = [1, 1]} : vector<16x384xf32> to vector<16x128xf32>
    %60 = vector.extract_strided_slice %55 {offsets = [0, 256], sizes = [16, 128], strides = [1, 1]} : vector<16x384xf32> to vector<16x128xf32>
    %61 = arith.mulf %59, %43 : vector<16x128xf32>
    %62 = arith.mulf %58, %57 : vector<16x128xf32>
    %63 = arith.addf %61, %62 : vector<16x128xf32>
    %64 = math.tanh %63 : vector<16x128xf32>
    %65 = arith.mulf %60, %64 : vector<16x128xf32>
    %c1_i32 = arith.constant 1 : i32
    %66 = arith.addi %12, %c1_i32 : i32
    %67 = vector.broadcast %66 : i32 to vector<16x1xi32>
    %68 = arith.cmpi slt, %67, %7 : vector<16x1xi32>
    %69 = vector.shape_cast %68 : vector<16x1xi1> to vector<16x1xi1>
    %70 = vector.broadcast %69 : vector<16x1xi1> to vector<16x128xi1>
    %71 = arith.select %70, %65, %40 : vector<16x128xi1>, vector<16x128xf32>
    %72 = vector.shape_cast %68 : vector<16x1xi1> to vector<16x1xi1>
    %73 = vector.broadcast %72 : vector<16x1xi1> to vector<16x128xi1>
    %74 = arith.select %73, %63, %43 : vector<16x128xi1>, vector<16x128xf32>
    %75 = vector.extract_strided_slice %6 {offsets = [32, 0], sizes = [16, 512], strides = [1, 1]} : vector<128x512xf32> to vector<16x512xf32>
    %76 = arith.truncf %71 : vector<16x128xf32> to vector<16x128xbf16>
    %cst_20 = arith.constant dense<0.000000e+00> : vector<16x512xf32>
    %77 = tpu.matmul %76, %9, %cst_20 {dimension_numbers = #tpu.dot_dimension_numbers<[1], [0], [0], [1], [0, 0, 1, 1], [], []>} : vector<16x128xbf16>, vector<128x512xbf16>, vector<16x512xf32> -> vector<16x512xf32>
    %78 = arith.addf %75, %77 : vector<16x512xf32>
    %79 = vector.broadcast %8 : vector<1x512xf32> to vector<16x512xf32>
    %80 = arith.addf %78, %79 : vector<16x512xf32>
    %81 = vector.extract_strided_slice %80 {offsets = [0, 0], sizes = [16, 384], strides = [1, 1]} : vector<16x512xf32> to vector<16x384xf32>
    %82 = arith.negf %81 : vector<16x384xf32>
    %83 = math.exp %82 : vector<16x384xf32>
    %cst_21 = arith.constant 1.000000e+00 : f32
    %84 = vector.broadcast %cst_21 : f32 to vector<16x384xf32>
    %85 = arith.addf %84, %83 : vector<16x384xf32>
    %86 = arith.divf %84, %85 : vector<16x384xf32>
    %87 = vector.extract_strided_slice %80 {offsets = [0, 384], sizes = [16, 128], strides = [1, 1]} : vector<16x512xf32> to vector<16x128xf32>
    %88 = math.tanh %87 : vector<16x128xf32>
    %89 = vector.extract_strided_slice %86 {offsets = [0, 0], sizes = [16, 128], strides = [1, 1]} : vector<16x384xf32> to vector<16x128xf32>
    %90 = vector.extract_strided_slice %86 {offsets = [0, 128], sizes = [16, 128], strides = [1, 1]} : vector<16x384xf32> to vector<16x128xf32>
    %91 = vector.extract_strided_slice %86 {offsets = [0, 256], sizes = [16, 128], strides = [1, 1]} : vector<16x384xf32> to vector<16x128xf32>
    %92 = arith.mulf %90, %74 : vector<16x128xf32>
    %93 = arith.mulf %89, %88 : vector<16x128xf32>
    %94 = arith.addf %92, %93 : vector<16x128xf32>
    %95 = math.tanh %94 : vector<16x128xf32>
    %96 = arith.mulf %91, %95 : vector<16x128xf32>
    %c2_i32 = arith.constant 2 : i32
    %97 = arith.addi %12, %c2_i32 : i32
    %98 = vector.broadcast %97 : i32 to vector<16x1xi32>
    %99 = arith.cmpi slt, %98, %7 : vector<16x1xi32>
    %100 = vector.shape_cast %99 : vector<16x1xi1> to vector<16x1xi1>
    %101 = vector.broadcast %100 : vector<16x1xi1> to vector<16x128xi1>
    %102 = arith.select %101, %96, %71 : vector<16x128xi1>, vector<16x128xf32>
    %103 = vector.shape_cast %99 : vector<16x1xi1> to vector<16x1xi1>
    %104 = vector.broadcast %103 : vector<16x1xi1> to vector<16x128xi1>
    %105 = arith.select %104, %94, %74 : vector<16x128xi1>, vector<16x128xf32>
    %106 = vector.extract_strided_slice %6 {offsets = [48, 0], sizes = [16, 512], strides = [1, 1]} : vector<128x512xf32> to vector<16x512xf32>
    %107 = arith.truncf %102 : vector<16x128xf32> to vector<16x128xbf16>
    %cst_22 = arith.constant dense<0.000000e+00> : vector<16x512xf32>
    %108 = tpu.matmul %107, %9, %cst_22 {dimension_numbers = #tpu.dot_dimension_numbers<[1], [0], [0], [1], [0, 0, 1, 1], [], []>} : vector<16x128xbf16>, vector<128x512xbf16>, vector<16x512xf32> -> vector<16x512xf32>
    %109 = arith.addf %106, %108 : vector<16x512xf32>
    %110 = vector.broadcast %8 : vector<1x512xf32> to vector<16x512xf32>
    %111 = arith.addf %109, %110 : vector<16x512xf32>
    %112 = vector.extract_strided_slice %111 {offsets = [0, 0], sizes = [16, 384], strides = [1, 1]} : vector<16x512xf32> to vector<16x384xf32>
    %113 = arith.negf %112 : vector<16x384xf32>
    %114 = math.exp %113 : vector<16x384xf32>
    %cst_23 = arith.constant 1.000000e+00 : f32
    %115 = vector.broadcast %cst_23 : f32 to vector<16x384xf32>
    %116 = arith.addf %115, %114 : vector<16x384xf32>
    %117 = arith.divf %115, %116 : vector<16x384xf32>
    %118 = vector.extract_strided_slice %111 {offsets = [0, 384], sizes = [16, 128], strides = [1, 1]} : vector<16x512xf32> to vector<16x128xf32>
    %119 = math.tanh %118 : vector<16x128xf32>
    %120 = vector.extract_strided_slice %117 {offsets = [0, 0], sizes = [16, 128], strides = [1, 1]} : vector<16x384xf32> to vector<16x128xf32>
    %121 = vector.extract_strided_slice %117 {offsets = [0, 128], sizes = [16, 128], strides = [1, 1]} : vector<16x384xf32> to vector<16x128xf32>
    %122 = vector.extract_strided_slice %117 {offsets = [0, 256], sizes = [16, 128], strides = [1, 1]} : vector<16x384xf32> to vector<16x128xf32>
    %123 = arith.mulf %121, %105 : vector<16x128xf32>
    %124 = arith.mulf %120, %119 : vector<16x128xf32>
    %125 = arith.addf %123, %124 : vector<16x128xf32>
    %126 = math.tanh %125 : vector<16x128xf32>
    %127 = arith.mulf %122, %126 : vector<16x128xf32>
    %c3_i32 = arith.constant 3 : i32
    %128 = arith.addi %12, %c3_i32 : i32
    %129 = vector.broadcast %128 : i32 to vector<16x1xi32>
    %130 = arith.cmpi slt, %129, %7 : vector<16x1xi32>
    %131 = vector.shape_cast %130 : vector<16x1xi1> to vector<16x1xi1>
    %132 = vector.broadcast %131 : vector<16x1xi1> to vector<16x128xi1>
    %133 = arith.select %132, %127, %102 : vector<16x128xi1>, vector<16x128xf32>
    %134 = vector.shape_cast %130 : vector<16x1xi1> to vector<16x1xi1>
    %135 = vector.broadcast %134 : vector<16x1xi1> to vector<16x128xi1>
    %136 = arith.select %135, %125, %105 : vector<16x128xi1>, vector<16x128xf32>
    %137 = vector.extract_strided_slice %6 {offsets = [64, 0], sizes = [16, 512], strides = [1, 1]} : vector<128x512xf32> to vector<16x512xf32>
    %138 = arith.truncf %133 : vector<16x128xf32> to vector<16x128xbf16>
    %cst_24 = arith.constant dense<0.000000e+00> : vector<16x512xf32>
    %139 = tpu.matmul %138, %9, %cst_24 {dimension_numbers = #tpu.dot_dimension_numbers<[1], [0], [0], [1], [0, 0, 1, 1], [], []>} : vector<16x128xbf16>, vector<128x512xbf16>, vector<16x512xf32> -> vector<16x512xf32>
    %140 = arith.addf %137, %139 : vector<16x512xf32>
    %141 = vector.broadcast %8 : vector<1x512xf32> to vector<16x512xf32>
    %142 = arith.addf %140, %141 : vector<16x512xf32>
    %143 = vector.extract_strided_slice %142 {offsets = [0, 0], sizes = [16, 384], strides = [1, 1]} : vector<16x512xf32> to vector<16x384xf32>
    %144 = arith.negf %143 : vector<16x384xf32>
    %145 = math.exp %144 : vector<16x384xf32>
    %cst_25 = arith.constant 1.000000e+00 : f32
    %146 = vector.broadcast %cst_25 : f32 to vector<16x384xf32>
    %147 = arith.addf %146, %145 : vector<16x384xf32>
    %148 = arith.divf %146, %147 : vector<16x384xf32>
    %149 = vector.extract_strided_slice %142 {offsets = [0, 384], sizes = [16, 128], strides = [1, 1]} : vector<16x512xf32> to vector<16x128xf32>
    %150 = math.tanh %149 : vector<16x128xf32>
    %151 = vector.extract_strided_slice %148 {offsets = [0, 0], sizes = [16, 128], strides = [1, 1]} : vector<16x384xf32> to vector<16x128xf32>
    %152 = vector.extract_strided_slice %148 {offsets = [0, 128], sizes = [16, 128], strides = [1, 1]} : vector<16x384xf32> to vector<16x128xf32>
    %153 = vector.extract_strided_slice %148 {offsets = [0, 256], sizes = [16, 128], strides = [1, 1]} : vector<16x384xf32> to vector<16x128xf32>
    %154 = arith.mulf %152, %136 : vector<16x128xf32>
    %155 = arith.mulf %151, %150 : vector<16x128xf32>
    %156 = arith.addf %154, %155 : vector<16x128xf32>
    %157 = math.tanh %156 : vector<16x128xf32>
    %158 = arith.mulf %153, %157 : vector<16x128xf32>
    %c4_i32 = arith.constant 4 : i32
    %159 = arith.addi %12, %c4_i32 : i32
    %160 = vector.broadcast %159 : i32 to vector<16x1xi32>
    %161 = arith.cmpi slt, %160, %7 : vector<16x1xi32>
    %162 = vector.shape_cast %161 : vector<16x1xi1> to vector<16x1xi1>
    %163 = vector.broadcast %162 : vector<16x1xi1> to vector<16x128xi1>
    %164 = arith.select %163, %158, %133 : vector<16x128xi1>, vector<16x128xf32>
    %165 = vector.shape_cast %161 : vector<16x1xi1> to vector<16x1xi1>
    %166 = vector.broadcast %165 : vector<16x1xi1> to vector<16x128xi1>
    %167 = arith.select %166, %156, %136 : vector<16x128xi1>, vector<16x128xf32>
    %168 = vector.extract_strided_slice %6 {offsets = [80, 0], sizes = [16, 512], strides = [1, 1]} : vector<128x512xf32> to vector<16x512xf32>
    %169 = arith.truncf %164 : vector<16x128xf32> to vector<16x128xbf16>
    %cst_26 = arith.constant dense<0.000000e+00> : vector<16x512xf32>
    %170 = tpu.matmul %169, %9, %cst_26 {dimension_numbers = #tpu.dot_dimension_numbers<[1], [0], [0], [1], [0, 0, 1, 1], [], []>} : vector<16x128xbf16>, vector<128x512xbf16>, vector<16x512xf32> -> vector<16x512xf32>
    %171 = arith.addf %168, %170 : vector<16x512xf32>
    %172 = vector.broadcast %8 : vector<1x512xf32> to vector<16x512xf32>
    %173 = arith.addf %171, %172 : vector<16x512xf32>
    %174 = vector.extract_strided_slice %173 {offsets = [0, 0], sizes = [16, 384], strides = [1, 1]} : vector<16x512xf32> to vector<16x384xf32>
    %175 = arith.negf %174 : vector<16x384xf32>
    %176 = math.exp %175 : vector<16x384xf32>
    %cst_27 = arith.constant 1.000000e+00 : f32
    %177 = vector.broadcast %cst_27 : f32 to vector<16x384xf32>
    %178 = arith.addf %177, %176 : vector<16x384xf32>
    %179 = arith.divf %177, %178 : vector<16x384xf32>
    %180 = vector.extract_strided_slice %173 {offsets = [0, 384], sizes = [16, 128], strides = [1, 1]} : vector<16x512xf32> to vector<16x128xf32>
    %181 = math.tanh %180 : vector<16x128xf32>
    %182 = vector.extract_strided_slice %179 {offsets = [0, 0], sizes = [16, 128], strides = [1, 1]} : vector<16x384xf32> to vector<16x128xf32>
    %183 = vector.extract_strided_slice %179 {offsets = [0, 128], sizes = [16, 128], strides = [1, 1]} : vector<16x384xf32> to vector<16x128xf32>
    %184 = vector.extract_strided_slice %179 {offsets = [0, 256], sizes = [16, 128], strides = [1, 1]} : vector<16x384xf32> to vector<16x128xf32>
    %185 = arith.mulf %183, %167 : vector<16x128xf32>
    %186 = arith.mulf %182, %181 : vector<16x128xf32>
    %187 = arith.addf %185, %186 : vector<16x128xf32>
    %188 = math.tanh %187 : vector<16x128xf32>
    %189 = arith.mulf %184, %188 : vector<16x128xf32>
    %c5_i32 = arith.constant 5 : i32
    %190 = arith.addi %12, %c5_i32 : i32
    %191 = vector.broadcast %190 : i32 to vector<16x1xi32>
    %192 = arith.cmpi slt, %191, %7 : vector<16x1xi32>
    %193 = vector.shape_cast %192 : vector<16x1xi1> to vector<16x1xi1>
    %194 = vector.broadcast %193 : vector<16x1xi1> to vector<16x128xi1>
    %195 = arith.select %194, %189, %164 : vector<16x128xi1>, vector<16x128xf32>
    %196 = vector.shape_cast %192 : vector<16x1xi1> to vector<16x1xi1>
    %197 = vector.broadcast %196 : vector<16x1xi1> to vector<16x128xi1>
    %198 = arith.select %197, %187, %167 : vector<16x128xi1>, vector<16x128xf32>
    %199 = vector.extract_strided_slice %6 {offsets = [96, 0], sizes = [16, 512], strides = [1, 1]} : vector<128x512xf32> to vector<16x512xf32>
    %200 = arith.truncf %195 : vector<16x128xf32> to vector<16x128xbf16>
    %cst_28 = arith.constant dense<0.000000e+00> : vector<16x512xf32>
    %201 = tpu.matmul %200, %9, %cst_28 {dimension_numbers = #tpu.dot_dimension_numbers<[1], [0], [0], [1], [0, 0, 1, 1], [], []>} : vector<16x128xbf16>, vector<128x512xbf16>, vector<16x512xf32> -> vector<16x512xf32>
    %202 = arith.addf %199, %201 : vector<16x512xf32>
    %203 = vector.broadcast %8 : vector<1x512xf32> to vector<16x512xf32>
    %204 = arith.addf %202, %203 : vector<16x512xf32>
    %205 = vector.extract_strided_slice %204 {offsets = [0, 0], sizes = [16, 384], strides = [1, 1]} : vector<16x512xf32> to vector<16x384xf32>
    %206 = arith.negf %205 : vector<16x384xf32>
    %207 = math.exp %206 : vector<16x384xf32>
    %cst_29 = arith.constant 1.000000e+00 : f32
    %208 = vector.broadcast %cst_29 : f32 to vector<16x384xf32>
    %209 = arith.addf %208, %207 : vector<16x384xf32>
    %210 = arith.divf %208, %209 : vector<16x384xf32>
    %211 = vector.extract_strided_slice %204 {offsets = [0, 384], sizes = [16, 128], strides = [1, 1]} : vector<16x512xf32> to vector<16x128xf32>
    %212 = math.tanh %211 : vector<16x128xf32>
    %213 = vector.extract_strided_slice %210 {offsets = [0, 0], sizes = [16, 128], strides = [1, 1]} : vector<16x384xf32> to vector<16x128xf32>
    %214 = vector.extract_strided_slice %210 {offsets = [0, 128], sizes = [16, 128], strides = [1, 1]} : vector<16x384xf32> to vector<16x128xf32>
    %215 = vector.extract_strided_slice %210 {offsets = [0, 256], sizes = [16, 128], strides = [1, 1]} : vector<16x384xf32> to vector<16x128xf32>
    %216 = arith.mulf %214, %198 : vector<16x128xf32>
    %217 = arith.mulf %213, %212 : vector<16x128xf32>
    %218 = arith.addf %216, %217 : vector<16x128xf32>
    %219 = math.tanh %218 : vector<16x128xf32>
    %220 = arith.mulf %215, %219 : vector<16x128xf32>
    %c6_i32 = arith.constant 6 : i32
    %221 = arith.addi %12, %c6_i32 : i32
    %222 = vector.broadcast %221 : i32 to vector<16x1xi32>
    %223 = arith.cmpi slt, %222, %7 : vector<16x1xi32>
    %224 = vector.shape_cast %223 : vector<16x1xi1> to vector<16x1xi1>
    %225 = vector.broadcast %224 : vector<16x1xi1> to vector<16x128xi1>
    %226 = arith.select %225, %220, %195 : vector<16x128xi1>, vector<16x128xf32>
    %227 = vector.shape_cast %223 : vector<16x1xi1> to vector<16x1xi1>
    %228 = vector.broadcast %227 : vector<16x1xi1> to vector<16x128xi1>
    %229 = arith.select %228, %218, %198 : vector<16x128xi1>, vector<16x128xf32>
    %230 = vector.extract_strided_slice %6 {offsets = [112, 0], sizes = [16, 512], strides = [1, 1]} : vector<128x512xf32> to vector<16x512xf32>
    %231 = arith.truncf %226 : vector<16x128xf32> to vector<16x128xbf16>
    %cst_30 = arith.constant dense<0.000000e+00> : vector<16x512xf32>
    %232 = tpu.matmul %231, %9, %cst_30 {dimension_numbers = #tpu.dot_dimension_numbers<[1], [0], [0], [1], [0, 0, 1, 1], [], []>} : vector<16x128xbf16>, vector<128x512xbf16>, vector<16x512xf32> -> vector<16x512xf32>
    %233 = arith.addf %230, %232 : vector<16x512xf32>
    %234 = vector.broadcast %8 : vector<1x512xf32> to vector<16x512xf32>
    %235 = arith.addf %233, %234 : vector<16x512xf32>
    %236 = vector.extract_strided_slice %235 {offsets = [0, 0], sizes = [16, 384], strides = [1, 1]} : vector<16x512xf32> to vector<16x384xf32>
    %237 = arith.negf %236 : vector<16x384xf32>
    %238 = math.exp %237 : vector<16x384xf32>
    %cst_31 = arith.constant 1.000000e+00 : f32
    %239 = vector.broadcast %cst_31 : f32 to vector<16x384xf32>
    %240 = arith.addf %239, %238 : vector<16x384xf32>
    %241 = arith.divf %239, %240 : vector<16x384xf32>
    %242 = vector.extract_strided_slice %235 {offsets = [0, 384], sizes = [16, 128], strides = [1, 1]} : vector<16x512xf32> to vector<16x128xf32>
    %243 = math.tanh %242 : vector<16x128xf32>
    %244 = vector.extract_strided_slice %241 {offsets = [0, 0], sizes = [16, 128], strides = [1, 1]} : vector<16x384xf32> to vector<16x128xf32>
    %245 = vector.extract_strided_slice %241 {offsets = [0, 128], sizes = [16, 128], strides = [1, 1]} : vector<16x384xf32> to vector<16x128xf32>
    %246 = vector.extract_strided_slice %241 {offsets = [0, 256], sizes = [16, 128], strides = [1, 1]} : vector<16x384xf32> to vector<16x128xf32>
    %247 = arith.mulf %245, %229 : vector<16x128xf32>
    %248 = arith.mulf %244, %243 : vector<16x128xf32>
    %249 = arith.addf %247, %248 : vector<16x128xf32>
    %250 = math.tanh %249 : vector<16x128xf32>
    %251 = arith.mulf %246, %250 : vector<16x128xf32>
    %c7_i32 = arith.constant 7 : i32
    %252 = arith.addi %12, %c7_i32 : i32
    %253 = vector.broadcast %252 : i32 to vector<16x1xi32>
    %254 = arith.cmpi slt, %253, %7 : vector<16x1xi32>
    %255 = vector.shape_cast %254 : vector<16x1xi1> to vector<16x1xi1>
    %256 = vector.broadcast %255 : vector<16x1xi1> to vector<16x128xi1>
    %257 = arith.select %256, %251, %226 : vector<16x128xi1>, vector<16x128xf32>
    %258 = vector.shape_cast %254 : vector<16x1xi1> to vector<16x1xi1>
    %259 = vector.broadcast %258 : vector<16x1xi1> to vector<16x128xi1>
    %260 = arith.select %259, %249, %229 : vector<16x128xi1>, vector<16x128xf32>
    %c0_32 = arith.constant 0 : index
    %c0_33 = arith.constant 0 : index
    %261 = vector.load %arg14[%c0_32, %c0_33] : memref<16x128xf32, #tpu.memory_space<vmem>>, vector<16x128xf32>
    tpu.vector_store %arg14[%c0_32, %c0_33], %257 {strides = array<i32>} : memref<16x128xf32, #tpu.memory_space<vmem>>, vector<16x128xf32>,
    %c0_34 = arith.constant 0 : index
    %c0_35 = arith.constant 0 : index
    %262 = vector.load %arg15[%c0_34, %c0_35] : memref<16x128xf32, #tpu.memory_space<vmem>>, vector<16x128xf32>
    tpu.vector_store %arg15[%c0_34, %c0_35], %260 {strides = array<i32>} : memref<16x128xf32, #tpu.memory_space<vmem>>, vector<16x128xf32>,
    %c0_i32_36 = arith.constant 0 : i32
    %263 = arith.cmpi eq, %arg1, %c0_i32_36 : i32
    %264 = arith.extui %263 : i1 to i32
    %c0_i32_37 = arith.constant 0 : i32
    %265 = arith.cmpi ne, %264, %c0_i32_37 : i32
    scf.if %265 {
      %c0_38 = arith.constant 0 : index
      %c0_39 = arith.constant 0 : index
      %266 = vector.load %arg4[%c0_38, %c0_39] : memref<16x16xbf16, #tpu.memory_space<vmem>>, vector<16x16xbf16>
      %c0_40 = arith.constant 0 : index
      %c0_41 = arith.constant 0 : index
      %267 = vector.load %arg8[%c0_40, %c0_41] : memref<16x512xbf16, #tpu.memory_space<vmem>>, vector<16x512xbf16>
      %cst_42 = arith.constant dense<0.000000e+00> : vector<16x512xf32>
      %268 = tpu.matmul %266, %267, %cst_42 {dimension_numbers = #tpu.dot_dimension_numbers<[1], [0], [0], [1], [0, 0, 1, 1], [], []>} : vector<16x16xbf16>, vector<16x512xbf16>, vector<16x512xf32> -> vector<16x512xf32>
      %c0_43 = arith.constant 0 : index
      %c0_44 = arith.constant 0 : index
      %269 = vector.load %arg9[%c0_43, %c0_44] : memref<1x512xf32, #tpu.memory_space<vmem>>, vector<1x512xf32>
      %270 = vector.broadcast %269 : vector<1x512xf32> to vector<16x512xf32>
      %271 = arith.addf %268, %270 : vector<16x512xf32>
      %cst_45 = arith.constant 0.000000e+00 : f32
      %272 = vector.broadcast %cst_45 : f32 to vector<16x128xf32>
      %273 = vector.extract_strided_slice %271 {offsets = [0, 0], sizes = [16, 384], strides = [1, 1]} : vector<16x512xf32> to vector<16x384xf32>
      %274 = arith.negf %273 : vector<16x384xf32>
      %275 = math.exp %274 : vector<16x384xf32>
      %cst_46 = arith.constant 1.000000e+00 : f32
      %276 = vector.broadcast %cst_46 : f32 to vector<16x384xf32>
      %277 = arith.addf %276, %275 : vector<16x384xf32>
      %278 = arith.divf %276, %277 : vector<16x384xf32>
      %279 = vector.extract_strided_slice %271 {offsets = [0, 384], sizes = [16, 128], strides = [1, 1]} : vector<16x512xf32> to vector<16x128xf32>
      %280 = math.tanh %279 : vector<16x128xf32>
      %281 = vector.extract_strided_slice %278 {offsets = [0, 0], sizes = [16, 128], strides = [1, 1]} : vector<16x384xf32> to vector<16x128xf32>
      %282 = vector.extract_strided_slice %278 {offsets = [0, 128], sizes = [16, 128], strides = [1, 1]} : vector<16x384xf32> to vector<16x128xf32>
      %283 = vector.extract_strided_slice %278 {offsets = [0, 256], sizes = [16, 128], strides = [1, 1]} : vector<16x384xf32> to vector<16x128xf32>
      %284 = arith.mulf %282, %272 : vector<16x128xf32>
      %285 = arith.mulf %281, %280 : vector<16x128xf32>
      %286 = arith.addf %284, %285 : vector<16x128xf32>
      %287 = math.tanh %286 : vector<16x128xf32>
      %288 = arith.mulf %283, %287 : vector<16x128xf32>
      %289 = arith.truncf %257 : vector<16x128xf32> to vector<16x128xbf16>
      %c0_47 = arith.constant 0 : index
      %c0_48 = arith.constant 0 : index
      %290 = vector.load %arg10[%c0_47, %c0_48] : memref<128x128xbf16, #tpu.memory_space<vmem>>, vector<128x128xbf16>
      %cst_49 = arith.constant dense<0.000000e+00> : vector<16x128xf32>
      %291 = tpu.matmul %289, %290, %cst_49 {dimension_numbers = #tpu.dot_dimension_numbers<[1], [0], [0], [1], [0, 0, 1, 1], [], []>} : vector<16x128xbf16>, vector<128x128xbf16>, vector<16x128xf32> -> vector<16x128xf32>
      %292 = arith.truncf %288 : vector<16x128xf32> to vector<16x128xbf16>
      %c0_50 = arith.constant 0 : index
      %c0_51 = arith.constant 0 : index
      %293 = vector.load %arg11[%c0_50, %c0_51] : memref<128x128xbf16, #tpu.memory_space<vmem>>, vector<128x128xbf16>
      %cst_52 = arith.constant dense<0.000000e+00> : vector<16x128xf32>
      %294 = tpu.matmul %292, %293, %cst_52 {dimension_numbers = #tpu.dot_dimension_numbers<[1], [0], [0], [1], [0, 0, 1, 1], [], []>} : vector<16x128xbf16>, vector<128x128xbf16>, vector<16x128xf32> -> vector<16x128xf32>
      %295 = arith.addf %291, %294 : vector<16x128xf32>
      %c0_53 = arith.constant 0 : index
      %c0_54 = arith.constant 0 : index
      %296 = vector.load %arg12[%c0_53, %c0_54] : memref<1x128xf32, #tpu.memory_space<vmem>>, vector<1x128xf32>
      %297 = vector.broadcast %296 : vector<1x128xf32> to vector<16x128xf32>
      %298 = arith.addf %295, %297 : vector<16x128xf32>
      %c0_55 = arith.constant 0 : index
      %c0_56 = arith.constant 0 : index
      %299 = vector.load %arg13[%c0_55, %c0_56] : memref<16x128xf32, #tpu.memory_space<vmem>>, vector<16x128xf32>
      tpu.vector_store %arg13[%c0_55, %c0_56], %298 {strides = array<i32>} : memref<16x128xf32, #tpu.memory_space<vmem>>, vector<16x128xf32>,
    } else {
    }
    return
  }
  func.func @transform_0(%arg0: i32, %arg1: i32) -> (i32, i32, i32) {
    %c0_i32 = arith.constant 0 : i32
    %c0_i32_0 = arith.constant 0 : i32
    return %arg1, %arg0, %c0_i32 : i32, i32, i32
  }
  func.func @transform_1(%arg0: i32, %arg1: i32) -> (i32, i32) {
    %c0_i32 = arith.constant 0 : i32
    %c0_i32_0 = arith.constant 0 : i32
    return %arg0, %c0_i32 : i32, i32
  }
  func.func @transform_2(%arg0: i32, %arg1: i32) -> (i32, i32) {
    %c0_i32 = arith.constant 0 : i32
    %c0_i32_0 = arith.constant 0 : i32
    return %arg0, %c0_i32 : i32, i32
  }
  func.func @transform_3(%arg0: i32, %arg1: i32) -> (i32, i32) {
    %c0_i32 = arith.constant 0 : i32
    %c0_i32_0 = arith.constant 0 : i32
    %c0_i32_1 = arith.constant 0 : i32
    return %c0_i32, %c0_i32_0 : i32, i32
  }
  func.func @transform_4(%arg0: i32, %arg1: i32) -> (i32, i32) {
    %c0_i32 = arith.constant 0 : i32
    %c0_i32_0 = arith.constant 0 : i32
    %c0_i32_1 = arith.constant 0 : i32
    return %c0_i32, %c0_i32_0 : i32, i32
  }
  func.func @transform_5(%arg0: i32, %arg1: i32) -> (i32, i32) {
    %c0_i32 = arith.constant 0 : i32
    %c0_i32_0 = arith.constant 0 : i32
    %c0_i32_1 = arith.constant 0 : i32
    return %c0_i32, %c0_i32_0 : i32, i32
  }
  func.func @transform_6(%arg0: i32, %arg1: i32) -> (i32, i32) {
    %c0_i32 = arith.constant 0 : i32
    %c0_i32_0 = arith.constant 0 : i32
    %c0_i32_1 = arith.constant 0 : i32
    return %c0_i32, %c0_i32_0 : i32, i32
  }
  func.func @transform_7(%arg0: i32, %arg1: i32) -> (i32, i32) {
    %c0_i32 = arith.constant 0 : i32
    %c0_i32_0 = arith.constant 0 : i32
    %c0_i32_1 = arith.constant 0 : i32
    return %c0_i32, %c0_i32_0 : i32, i32
  }
  func.func @transform_8(%arg0: i32, %arg1: i32) -> (i32, i32) {
    %c0_i32 = arith.constant 0 : i32
    %c0_i32_0 = arith.constant 0 : i32
    %c0_i32_1 = arith.constant 0 : i32
    return %c0_i32, %c0_i32_0 : i32, i32
  }
  func.func @transform_9(%arg0: i32, %arg1: i32) -> (i32, i32) {
    %c0_i32 = arith.constant 0 : i32
    %c0_i32_0 = arith.constant 0 : i32
    %c0_i32_1 = arith.constant 0 : i32
    return %c0_i32, %c0_i32_0 : i32, i32
  }
  func.func @transform_10(%arg0: i32, %arg1: i32) -> (i32, i32) {
    %c0_i32 = arith.constant 0 : i32
    %c0_i32_0 = arith.constant 0 : i32
    %c0_i32_1 = arith.constant 0 : i32
    return %c0_i32, %c0_i32_0 : i32, i32
  }
  func.func @transform_11(%arg0: i32, %arg1: i32) -> (i32, i32) {
    %c0_i32 = arith.constant 0 : i32
    %c0_i32_0 = arith.constant 0 : i32
    return %arg0, %c0_i32 : i32, i32
  }
}

</mosaic_0001>

<bundles_post_ra>
// kernel: tpu_custom_call.1
= control target key start
LH: loop header
LB: loop body
LE: loop exit
PB: predicated region body
PF: predicated region fallthrough
CT: control target
= control target key end

     0   :  { %16 = vsyncpa [#allocation5], 0  ;;  %s4299_s0 = inlined_call_operand.hbm [shape: bf16[8,16,16], index: 0, kind: input, shape index: {}]   ;;  %s4300_s1 = inlined_call_operand.vmem [shape: s32[16,1], index: 1, kind: input, shape index: {}]   ;;  %s4301_s2 = inlined_call_operand.vmem [shape: bf16[16,16], index: 2, kind: input, shape index: {}]   ;;  %s4302_s3 = inlined_call_operand.hbm [shape: bf16[16,512], index: 3, kind: input, shape index: {}]   ;;  %s4303_s4 = inlined_call_operand.hbm [shape: bf16[128,512], index: 4, kind: input, shape index: {}]   ;;  %s4304_s5 = inlined_call_operand.vmem [shape: f32[1,512], index: 5, kind: input, shape index: {}]   ;;  %s4305_s6 = inlined_call_operand.hbm [shape: bf16[16,512], index: 6, kind: input, shape index: {}]   ;;  %s4306_s7 = inlined_call_operand.vmem [shape: f32[1,512], index: 7, kind: input, shape index: {}]   ;;  %s4307_s8 = inlined_call_operand.hbm [shape: bf16[128,128], index: 8, kind: input, shape index: {}]   ;;  %s4308_s9 = inlined_call_operand.hbm [shape: bf16[128,128], index: 9, kind: input, shape index: {}]   ;;  %s4309_s10 = inlined_call_operand.vmem [shape: f32[1,128], index: 10, kind: input, shape index: {}]   ;;  %s4310_s11 = inlined_call_operand.hbm [shape: f32[16,128], index: 11, kind: output, shape index: {}]  }
   0x1   :  { %17 = vsyncpa [#allocation8], 0 }
   0x2   :  { %18 = vsyncpa [#allocation11], 0 }
   0x3   :  { %19 = vsyncpa [#allocation14], 0 }
   0x4   :  { %20 = vsyncpa [#allocation6], 0  ;;  %s3265_s17 = smov [#allocation7]  }
   0x5   :  { %s42_s18 = sshll.u32 %s3265_s17, 4  ;;  %s43_s18 = int_to_ptr.vmem [resolvable:$true] %s42_s18 }
   0x6   :  { %s3123_s19 = scalar_lea.vmem %s43_s18, 512  ;;  %p3128_p1 = scmp.lt.s32.totalorder %s43_s18, %s43_s18 }
   0x7   :  { %p3124_p0 = scmp.ne.s32.totalorder %s43_s18, %s3123_s19  ;;  %p3129_p2 = scmp.lt.s32.totalorder %s3123_s19, %s3123_s19 }
   0x9   :  { %p3130_p3 = por %p3129_p2, %p3128_p1 }
   0xb   :  { %p3131_p4 = pnand %p3130_p3, %p3124_p0 }
   0xd   :  { %3134 = shalt.err (!%p3131_p4)
}
   0xe   :  { %s3266_s20 = smov 256   ;;  %s3267_s21 = smov 16  }
   0xf   :  { %48 = dma.hbm_to_vmem [thread:$0]  %s4302_s3, 512, %s43_s18, [#allocation8], %s3266_s20, %s3266_s20, %s3267_s21  }
  0x10   :  { %s3268_s24 = smov [#allocation10]   ;;  %s3269_s26 = smov [#allocation4]  }
  0x11   :  { %s68_s25 = sshll.u32 %s3268_s24, 4  ;;  %s26_s27 = sshll.u32 %s3269_s26, 4  ;;  %s69_s25 = int_to_ptr.vmem [resolvable:$true] %s68_s25  ;;  %s27_s27 = int_to_ptr.vmem [resolvable:$true] %s26_s27 }
  0x12   :  { %s3143_s28 = scalar_lea.vmem %s69_s25, 512  ;;  %p3148_p6 = scmp.lt.s32.totalorder %s69_s25, %s69_s25 }
  0x13   :  { %p3144_p5 = scmp.ne.s32.totalorder %s69_s25, %s3143_s28  ;;  %p3149_p7 = scmp.lt.s32.totalorder %s3143_s28, %s3143_s28 }
  0x15   :  { %p3150_p8 = por %p3149_p7, %p3148_p6 }
  0x17   :  { %p3151_p9 = pnand %p3150_p8, %p3144_p5 }
  0x19   :  { %3154 = shalt.err (!%p3151_p9)
}
  0x1a   :  { %74 = dma.hbm_to_vmem [thread:$0]  %s4305_s6, 512, %s69_s25, [#allocation11], %s3266_s20, %s3266_s20, %s3267_s21  }
  0x1b   :  { %s3163_s3 = scalar_lea.vmem %s27_s27, 1024  ;;  %p3168_p11 = scmp.lt.s32.totalorder %s27_s27, %s27_s27 }
  0x1c   :  { %p3164_p10 = scmp.ne.s32.totalorder %s27_s27, %s3163_s3  ;;  %p3169_p12 = scmp.lt.s32.totalorder %s3163_s3, %s3163_s3 }
  0x1e   :  { %p3170_p13 = por %p3169_p12, %p3168_p11 }
  0x20   :  { %p3171_p0 = pnand %p3170_p13, %p3164_p10 }
  0x22   :  { %3174 = shalt.err (!%p3171_p0)
}
  0x23   :  { %s3270_s12 = smov 64   ;;  %s3271_s13 = smov 4  }
  0x24   :  { %32 = dma.hbm_to_vmem [thread:$0]  %s4299_s0, 1024, %s27_s27, [#allocation5], %s3270_s12, %s3270_s12, %s3271_s13  }
  0x25   :  { %s3272_s16 = smov [#allocation9]   ;;  %s3273_s6 = smov [#allocation12]  }
  0x26   :  { %s54_s17 = sshll.u32 %s3272_s16, 4  ;;  %s82_s18 = sshll.u32 %s3273_s6, 4  ;;  %s55_s17 = int_to_ptr.vmem [resolvable:$true] %s54_s17  ;;  %s83_s18 = int_to_ptr.vmem [resolvable:$true] %s82_s18 }
  0x27   :  { %s3183_s19 = scalar_lea.vmem %s55_s17, 4096  ;;  %p3188_p2 = scmp.lt.s32.totalorder %s55_s17, %s55_s17 }
  0x28   :  { %p3184_p1 = scmp.ne.s32.totalorder %s55_s17, %s3183_s19  ;;  %p3189_p3 = scmp.lt.s32.totalorder %s3183_s19, %s3183_s19 }
  0x2a   :  { %p3190_p4 = por %p3189_p3, %p3188_p2 }
  0x2c   :  { %p3191_p5 = pnand %p3190_p4, %p3184_p1 }
  0x2e   :  { %3194 = shalt.err (!%p3191_p5)
}
  0x2f   :  { %60 = dma.hbm_to_vmem [thread:$0]  %s4303_s4, 4096, %s55_s17, [#allocation8], %s3266_s20, %s3266_s20, %s3267_s21  }
  0x30   :  { %s3203_s0 = scalar_lea.vmem %s83_s18, 1024  ;;  %p3208_p7 = scmp.lt.s32.totalorder %s83_s18, %s83_s18 }
  0x31   :  { %p3204_p6 = scmp.ne.s32.totalorder %s83_s18, %s3203_s0  ;;  %p3209_p8 = scmp.lt.s32.totalorder %s3203_s0, %s3203_s0 }
  0x33   :  { %p3210_p9 = por %p3209_p8, %p3208_p7 }
  0x35   :  { %p3211_p10 = pnand %p3210_p9, %p3204_p6 }
  0x37   :  { %3214 = shalt.err (!%p3211_p10)
}
  0x38   :  { %88 = dma.hbm_to_vmem [thread:$0]  %s4307_s8, 1024, %s83_s18, [#allocation11], %s3270_s12, %s3270_s12, %s3271_s13  }
  0x39   :  { %s3274_s26 = smov [#allocation13]  }
  0x3a   :  { %s94_s27 = sshll.u32 %s3274_s26, 4  ;;  %s95_s27 = int_to_ptr.vmem [resolvable:$true] %s94_s27 }
  0x3b   :  { %s3223_s28 = scalar_lea.vmem %s95_s27, 1024  ;;  %p3228_p12 = scmp.lt.s32.totalorder %s95_s27, %s95_s27 }
  0x3c   :  { %p3224_p11 = scmp.ne.s32.totalorder %s95_s27, %s3223_s28  ;;  %p3229_p13 = scmp.lt.s32.totalorder %s3223_s28, %s3223_s28 }
  0x3e   :  { %p3230_p0 = por %p3229_p13, %p3228_p12 }
  0x40   :  { %p3231_p1 = pnand %p3230_p0, %p3224_p11 }
  0x42   :  { %3234 = shalt.err (!%p3231_p1)
}
  0x43   :  { %100 = dma.hbm_to_vmem [thread:$0]  %s4308_s9, 1024, %s95_s27, [#allocation14], %s3270_s12, %s3270_s12, %s3271_s13  }
  0x44   :  { %3255 = dma.done.wait [#allocation5], 1024  }
  0x45   :  { %3256 = vsyncadd [#allocation5], 4294966272 }
  0x46   :  { %3257 = dma.done.wait [#allocation8], 4608  }
  0x47   :  { %3258 = vsyncadd [#allocation8], 4294962688 }
  0x48   :  { %3259 = dma.done.wait [#allocation11], 1536  }
  0x49   :  { %3260 = vsyncadd [#allocation11], 4294965760 }
  0x4a   :  { %3261 = dma.done.wait [#allocation14], 1024  }
  0x4b   :  { %3262 = vsyncadd [#allocation14], 4294966272  ;;  %v4311_v0 = vmov 0   ;;  %v2710_v1 = vld [vmem:[#allocation7 + $0x4] ss:$16 sps:$4 sm:$0xff]   ;;  %vm210_vm0 = vcmask 130048  }
  0x4c   :  { %267 = vmatprep.mubr.bf16.mxu0 %v4311_v0  ;;  %380 = vmatprep.mubr.bf16.mxu1 %v4311_v0  ;;  %v2712_v2 = vld [vmem:[#allocation7 + $0xc] ss:$16 sps:$4 sm:$0xff]   ;;  %v2714_v3 = vld [vmem:[#allocation7] ss:$16 sps:$4 sm:$0xff]   ;;  %v2715_v4 = vld [vmem:[#allocation7 + $0x8] ss:$16 sps:$4 sm:$0xff]  }
  0x4d   :  { %2708 = vset.pattern.permute.xlu0 %v4311_v0  ;;  %2709 = vset.pattern.permute.xlu1 %v4311_v0  ;;  %v2716_v5 = vld [vmem:[#allocation4] sm:$0xff]   ;;  %v3399_v11 = vld [vmem:[#allocation9 + $0xec] ss:$16 sps:$4 sm:$0xff]   ;;  %v3401_v12 = vld [vmem:[#allocation9 + $0xe8] ss:$16 sps:$4 sm:$0xff]   ;;  %v3276_v55 = vmov 0.0|0.0  }
  0x4e   :  { %249 = vmatprep.subr.bf16.mxu0 %v2710_v1  ;;  %362 = vmatprep.subr.bf16.mxu1 %v2712_v2  ;;  %v3382_v6 = vld [vmem:[#allocation9 + $0xe4] ss:$16 sps:$4 sm:$0xff]   ;;  %v3384_v7 = vld [vmem:[#allocation9 + $0xe0] ss:$16 sps:$4 sm:$0xff]   ;;  %v2720_v13 = vld [vmem:[#allocation4 + $0x8] sm:$0xff]   ;;  %s3279_s14 = smov [#allocation15]  }
  0x4f   :  { %250 = vmatpush1.bf16.msra.mxu0 %v2714_v3  ;;  %363 = vmatpush1.bf16.msra.mxu1 %v2715_v4  ;;  %v3387_v8 = vld [vmem:[#allocation9 + $0xc4] ss:$16 sps:$4 sm:$0xff]   ;;  %v3393_v9 = vld [vmem:[#allocation9 + $0xc0] ss:$16 sps:$4 sm:$0xff]   ;;  %v3411_v16 = vld [vmem:[#allocation9 + $0xcc] ss:$16 sps:$4 sm:$0xff]  }
  0x50   :  { %662 = vmatprep.subr.bf16.mxu0 %v3382_v6  ;;  %v3397_v10 = vld [vmem:[#allocation9 + $0xa4] ss:$16 sps:$4 sm:$0xff]   ;;  %v3404_v14 = vld [vmem:[#allocation9 + $0xa0] ss:$16 sps:$4 sm:$0xff]   ;;  %705 = vmatprep.subr.bf16.mxu1 %v3399_v11  ;;  %v3413_v17 = vld [vmem:[#allocation9 + $0xc8] ss:$16 sps:$4 sm:$0xff]  }
  0x51   :  { %v3409_v15 = vld [vmem:[#allocation9 + $0x84] ss:$16 sps:$4 sm:$0xff]   ;;  %v3419_v18 = vld [vmem:[#allocation9 + $0x80] ss:$16 sps:$4 sm:$0xff]   ;;  %v3425_v20 = vld [vmem:[#allocation9 + $0xac] ss:$16 sps:$4 sm:$0xff]  }
  0x52   :  { %2485 = vmatmul.mubr.msk.bf16.vlgmr.msra.gmra.mxu0 %vm210_vm0, %v2716_v5  ;;  %2493 = vmatmul.mubr.msk.bf16.vlgmr.msra.gmra.mxu1 %vm210_vm0, %v2716_v5  ;;  %v3421_v19 = vld [vmem:[#allocation9 + $0x64] ss:$16 sps:$4 sm:$0xff]   ;;  %v3429_v21 = vld [vmem:[#allocation9 + $0xa8] ss:$16 sps:$4 sm:$0xff]   ;;  %v3432_v23 = vld [vmem:[#allocation9 + $0x60] ss:$16 sps:$4 sm:$0xff]  }
  0x53   :  { %663 = vmatpush1.bf16.msra.mxu0 %v3384_v7  ;;  %277 = vmatprep.mubr.bf16.mxu0 %v4311_v0  ;;  %v2724_v22 = vld [vmem:[#allocation4 + $0x10] sm:$0xff]   ;;  %v3437_v25 = vld [vmem:[#allocation9 + $0x8c] ss:$16 sps:$4 sm:$0xff]   ;;  %v3441_v26 = vld [vmem:[#allocation9 + $0x88] ss:$16 sps:$4 sm:$0xff]   ;;  %s2458_s15 = sshll.u32 %s3279_s14, 4  ;;  %s2459_s15 = int_to_ptr.vmem [resolvable:$true] %s2458_s15 }
  0x54   :  { %390 = vmatprep.mubr.bf16.mxu1 %v4311_v0  ;;  %664 = vmatprep.subr.bf16.mxu0 %v3387_v8  ;;  %v3435_v24 = vld [vmem:[#allocation9 + $0x44] ss:$16 sps:$4 sm:$0xff]   ;;  %v3447_v27 = vld [vmem:[#allocation9 + $0x6c] ss:$16 sps:$4 sm:$0xff]   ;;  %v3450_v28 = vld [vmem:[#allocation9 + $0x40] ss:$16 sps:$4 sm:$0xff]   ;;  %p3240_p3 = scmp.lt.s32.totalorder %s2459_s15, %s2459_s15 }
  0x55   :  { %706 = vmatpush1.bf16.msra.mxu1 %v3401_v12  ;;  %v3455_v29 = vld [vmem:[#allocation9 + $0x24] ss:$16 sps:$4 sm:$0xff]   ;;  %v3457_v30 = vld [vmem:[#allocation9 + $0x68] ss:$16 sps:$4 sm:$0xff]   ;;  %v3460_v32 = vld [vmem:[#allocation9 + $0x20] ss:$16 sps:$4 sm:$0xff]  }
  0x56   :  { %707 = vmatprep.subr.bf16.mxu1 %v3411_v16  ;;  %v2731_v31 = vld [vmem:[#allocation4 + $0x18] sm:$0xff]   ;;  %v3469_v35 = vld [vmem:[#allocation9 + $0x4] ss:$16 sps:$4 sm:$0xff]   ;;  %v3475_v37 = vld [vmem:[#allocation9] ss:$16 sps:$4 sm:$0xff]   ;;  %s3235_s16 = scalar_lea.vmem %s2459_s15, 256 }
  0x57   :  { %665 = vmatpush1.bf16.msra.mxu0 %v3393_v9  ;;  %v3463_v33 = vld [vmem:[#allocation9 + $0x4c] ss:$16 sps:$4 sm:$0xff]   ;;  %v3467_v34 = vld [vmem:[#allocation9 + $0x48] ss:$16 sps:$4 sm:$0xff]   ;;  %v3482_v38 = vld [vmem:[%s4300_s1] sm:$0xff]  ;;  %p3236_p2 = scmp.ne.s32.totalorder %s2459_s15, %s3235_s16  ;;  %p3241_p4 = scmp.lt.s32.totalorder %s3235_s16, %s3235_s16 }
  0x58   :  { %666 = vmatprep.subr.bf16.mxu0 %v3397_v10  ;;  %v3473_v36 = vld [vmem:[#allocation9 + $0x2c] ss:$16 sps:$4 sm:$0xff]   ;;  %vm2539_vm1 = vcmp.gt.s32.totalorder %v3482_v38, 0  ;;  %vm2555_vm3 = vcmp.gt.s32.totalorder %v3482_v38, 2  ;;  %vm2563_vm4 = vcmp.gt.s32.totalorder %v3482_v38, 3  ;;  %v2738_v42 = vld [vmem:[#allocation4 + $0x20] sm:$0xff]  }
  0x59   :  { %708 = vmatpush1.bf16.msra.mxu1 %v3413_v17  ;;  %v3487_v39 = vld [vmem:[%s4300_s1 + $0x8] sm:$0xff]  ;;  %v836_v41 = vsel %vm2539_vm1, 1, %v4311_v0  ;;  %v1174_v46 = vsel %vm2555_vm3, 1, %v4311_v0  ;;  %v1343_v47 = vsel %vm2563_vm4, 1, %v4311_v0  ;;  %vm2571_vm5 = vcmp.gt.s32.totalorder %v3482_v38, 4  ;;  %v2752_v50 = vld [vmem:[#allocation4 + $0x30] sm:$0xff]   ;;  %p3242_p5 = por %p3241_p4, %p3240_p3 }
  0x5a   :  { %2486 = vmatmul.mubr.msk.bf16.gmra.mxu0 %vm210_vm0, %v2720_v13  ;;  %2494 = vmatmul.mubr.msk.bf16.gmra.mxu1 %vm210_vm0, %v2720_v13  ;;  %vm2540_vm2 = vcmp.gt.s32.totalorder %v3487_v39, 0  ;;  %v3497_v40 = vld [vmem:[#allocation9 + $0x28] ss:$16 sps:$4 sm:$0xff]   ;;  %v3501_v43 = vld [vmem:[#allocation9 + $0xc] ss:$16 sps:$4 sm:$0xff]   ;;  %v1512_v49 = vsel %vm2571_vm5, 1, %v4311_v0 }
  0x5b   :  { %287 = vmatprep.mubr.bf16.mxu0 %v4311_v0  ;;  %400 = vmatprep.mubr.bf16.mxu1 %v4311_v0  ;;  %v3503_v44 = vld [vmem:[#allocation9 + $0x8] ss:$16 sps:$4 sm:$0xff]   ;;  %v837_v45 = vsel %vm2540_vm2, 1, %v4311_v0  ;;  %vm2579_vm6 = vcmp.gt.s32.totalorder %v3482_v38, 5  ;;  %vm2587_vm7 = vcmp.gt.s32.totalorder %v3482_v38, 6  ;;  %vm2595_vm8 = vcmp.gt.s32.totalorder %v3482_v38, 7  ;;  %p3243_p6 = pnand %p3242_p5, %p3236_p2 }
  0x5c   :  { %667 = vmatpush1.bf16.msra.mxu0 %v3404_v14  ;;  %709 = vmatprep.subr.bf16.mxu1 %v3425_v20  ;;  %v2745_v48 = vld [vmem:[#allocation4 + $0x28] sm:$0xff]   ;;  %v1681_v51 = vsel %vm2579_vm6, 1, %v4311_v0  ;;  %v1850_v52 = vsel %vm2587_vm7, 1, %v4311_v0  ;;  %v2762_v53 = vld [vmem:[#allocation4 + $0x38] sm:$0xff]   ;;  %v2019_v54 = vsel %vm2595_vm8, 1, %v4311_v0  ;;  %vm2547_vm9 = vcmp.gt.s32.totalorder %v3482_v38, 1 }
  0x5d   :  { %668 = vmatprep.subr.bf16.mxu0 %v3409_v15  ;;  %710 = vmatpush1.bf16.msra.mxu1 %v3429_v21  ;;  %vm2548_vm10 = vcmp.gt.s32.totalorder %v3487_v39, 1  ;;  %v1005_v60 = vsel %vm2547_vm9, 1, %v4311_v0  ;;  %vm2556_vm11 = vcmp.gt.s32.totalorder %v3487_v39, 2  ;;  %vm2564_vm12 = vcmp.gt.s32.totalorder %v3487_v39, 3 }
  0x5e   :  { %711 = vmatprep.subr.bf16.mxu1 %v3437_v25  ;;  %839 = vperm.xlu0 %2708, %v836_v41   ;;  %v1006_v63 = vsel %vm2548_vm10, 1, %v4311_v0  ;;  %v1175_v5 = vsel %vm2556_vm11, 1, %v4311_v0  ;;  %v1344_v41 = vsel %vm2564_vm12, 1, %v4311_v0  ;;  %vm2572_vm13 = vcmp.gt.s32.totalorder %v3487_v39, 4 }
  0x5f   :  { %1008 = vperm.xlu1 %2709, %v1005_v60   ;;  %vm2580_vm14 = vcmp.gt.s32.totalorder %v3487_v39, 5  ;;  %vm2588_vm15 = vcmp.gt.s32.totalorder %v3487_v39, 6  ;;  %vm2596_vm1 = vcmp.gt.s32.totalorder %v3487_v39, 7 }
  0x60   :  { %669 = vmatpush1.bf16.msra.mxu0 %v3419_v18 }
  0x61   :  { %670 = vmatprep.subr.bf16.mxu0 %v3421_v19  ;;  %712 = vmatpush1.bf16.msra.mxu1 %v3441_v26 }
  0x62   :  { %2487 = vmatmul.mubr.msk.bf16.gmra.mxu0 %vm210_vm0, %v2724_v22  ;;  %2495 = vmatmul.mubr.msk.bf16.gmra.mxu1 %vm210_vm0, %v2724_v22 }
  0x63   :  { %297 = vmatprep.mubr.bf16.mxu0 %v4311_v0  ;;  %410 = vmatprep.mubr.bf16.mxu1 %v4311_v0 }
  0x64   :  { %671 = vmatpush1.bf16.msra.mxu0 %v3432_v23  ;;  %713 = vmatprep.subr.bf16.mxu1 %v3447_v27 }
  0x65   :  { %672 = vmatprep.subr.bf16.mxu0 %v3435_v24  ;;  %714 = vmatpush1.bf16.msra.mxu1 %v3457_v30 }
  0x66   :  { %715 = vmatprep.subr.bf16.mxu1 %v3463_v33  ;;  %842 = vperm.xlu0 %2708, %v837_v45  }
  0x67   :  { %1011 = vperm.xlu1 %2709, %v1006_v63  }
  0x68   :  { %673 = vmatpush1.bf16.msra.mxu0 %v3450_v28 }
  0x69   :  { %674 = vmatprep.subr.bf16.mxu0 %v3455_v29  ;;  %716 = vmatpush1.bf16.msra.mxu1 %v3467_v34 }
  0x6a   :  { %2488 = vmatmul.mubr.msk.bf16.gmra.mxu0 %vm210_vm0, %v2731_v31  ;;  %2496 = vmatmul.mubr.msk.bf16.gmra.mxu1 %vm210_vm0, %v2731_v31 }
  0x6b   :  { %307 = vmatprep.mubr.bf16.mxu0 %v4311_v0  ;;  %420 = vmatprep.mubr.bf16.mxu1 %v4311_v0 }
  0x6c   :  { %675 = vmatpush1.bf16.msra.mxu0 %v3460_v32  ;;  %717 = vmatprep.subr.bf16.mxu1 %v3473_v36 }
  0x6d   :  { %676 = vmatprep.subr.bf16.mxu0 %v3469_v35  ;;  %718 = vmatpush1.bf16.msra.mxu1 %v3497_v40 }
  0x6e   :  { %719 = vmatprep.subr.bf16.mxu1 %v3501_v43  ;;  %1177 = vperm.xlu0 %2708, %v1174_v46  }
  0x6f   :  { %1180 = vperm.xlu1 %2709, %v1175_v5   ;;  %v1851_v5 = vsel %vm2588_vm15, 1, %v4311_v0 }
  0x70   :  { %677 = vmatpush1.bf16.msra.mxu0 %v3475_v37 }
  0x71   :  { %851 = vmatprep.subr.bf16.mxu0 %v3382_v6  ;;  %720 = vmatpush1.bf16.msra.mxu1 %v3503_v44 }
  0x72   :  { %2489 = vmatmul.mubr.msk.bf16.gmra.mxu0 %vm210_vm0, %v2738_v42  ;;  %2497 = vmatmul.mubr.msk.bf16.gmra.mxu1 %vm210_vm0, %v2738_v42 }
  0x73   :  { %317 = vmatprep.mubr.bf16.mxu0 %v4311_v0  ;;  %430 = vmatprep.mubr.bf16.mxu1 %v4311_v0 }
  0x74   :  { %894 = vmatprep.subr.bf16.mxu1 %v3399_v11  ;;  %1346 = vperm.xlu0 %2708, %v1343_v47  }
  0x75   :  { %1349 = vperm.xlu1 %2709, %v1344_v41  }
  0x78   :  { %1515 = vperm.xlu0 %2708, %v1512_v49  }
  0x7a   :  { %2490 = vmatmul.mubr.msk.bf16.gmra.mxu0 %vm210_vm0, %v2745_v48  ;;  %2498 = vmatmul.mubr.msk.bf16.gmra.mxu1 %vm210_vm0, %v2745_v48  ;;  %v1513_v48 = vsel %vm2572_vm13, 1, %v4311_v0 }
  0x7b   :  { %327 = vmatprep.mubr.bf16.mxu0 %v4311_v0  ;;  %440 = vmatprep.mubr.bf16.mxu1 %v4311_v0 }
  0x7c   :  { %1684 = vperm.xlu0 %2708, %v1681_v51   ;;  %1518 = vperm.xlu1 %2709, %v1513_v48  }
  0x80   :  { %1853 = vperm.xlu0 %2708, %v1850_v52  }
  0x82   :  { %2491 = vmatmul.mubr.msk.bf16.gmra.mxu0 %vm210_vm0, %v2752_v50  ;;  %2499 = vmatmul.mubr.msk.bf16.gmra.mxu1 %vm210_vm0, %v2752_v50 }
  0x83   :  { %337 = vmatprep.mubr.bf16.mxu0 %v4311_v0  ;;  %450 = vmatprep.mubr.bf16.mxu1 %v4311_v0 }
  0x84   :  { %2022 = vperm.xlu0 %2708, %v2019_v54  }
  0x8a   :  { %2492 = vmatmul.mubr.msk.bf16.gmra.mxu0 %vm210_vm0, %v2762_v53  ;;  %2500 = vmatmul.mubr.msk.bf16.gmra.mxu1 %vm210_vm0, %v2762_v53  ;;  %v1682_v53 = vsel %vm2580_vm14, 1, %v4311_v0 }
  0x8b   :  { %694 = vmatprep.mubr.bf16.mxu0 %v4311_v0  ;;  %737 = vmatprep.mubr.bf16.mxu1 %v4311_v0 }
  0x8c   :  { %1687 = vperm.xlu1 %2709, %v1682_v53  }
  0x90   :  { %1856 = vperm.xlu1 %2709, %v1851_v5  }
  0x92   :  { %695 = vmatmul.mubr.bf16.vlgmr.msra.gmra.mxu0 %v3276_v55  ;;  %738 = vmatmul.mubr.bf16.vlgmr.msra.gmra.mxu1 %v3276_v55 }
  0x93   :  { %852 = vmatpush1.bf16.msra.mxu0 %v3384_v7  ;;  %895 = vmatpush1.bf16.msra.mxu1 %v3401_v12 }
  0x94   :  { %853 = vmatprep.subr.bf16.mxu0 %v3387_v8  ;;  %896 = vmatprep.subr.bf16.mxu1 %v3411_v16 }
  0x95   :  { %883 = vmatprep.mubr.bf16.mxu0 %v4311_v0  ;;  %926 = vmatprep.mubr.bf16.mxu1 %v4311_v0 }
  0x97   :  { %854 = vmatpush1.bf16.msra.mxu0 %v3393_v9  ;;  %897 = vmatpush1.bf16.msra.mxu1 %v3413_v17 }
  0x98   :  { %855 = vmatprep.subr.bf16.mxu0 %v3397_v10  ;;  %898 = vmatprep.subr.bf16.mxu1 %v3425_v20 }
  0x9b   :  { %856 = vmatpush1.bf16.msra.mxu0 %v3404_v14  ;;  %899 = vmatpush1.bf16.msra.mxu1 %v3429_v21 }
  0x9c   :  { %857 = vmatprep.subr.bf16.mxu0 %v3409_v15  ;;  %900 = vmatprep.subr.bf16.mxu1 %v3437_v25 }
  0x9f   :  { %858 = vmatpush1.bf16.msra.mxu0 %v3419_v18  ;;  %901 = vmatpush1.bf16.msra.mxu1 %v3441_v26 }
  0xa0   :  { %859 = vmatprep.subr.bf16.mxu0 %v3421_v19  ;;  %902 = vmatprep.subr.bf16.mxu1 %v3447_v27 }
  0xa3   :  { %860 = vmatpush1.bf16.msra.mxu0 %v3432_v23  ;;  %903 = vmatpush1.bf16.msra.mxu1 %v3457_v30 }
  0xa4   :  { %861 = vmatprep.subr.bf16.mxu0 %v3435_v24  ;;  %904 = vmatprep.subr.bf16.mxu1 %v3463_v33 }
  0xa7   :  { %862 = vmatpush1.bf16.msra.mxu0 %v3450_v28  ;;  %905 = vmatpush1.bf16.msra.mxu1 %v3467_v34 }
  0xa8   :  { %863 = vmatprep.subr.bf16.mxu0 %v3455_v29  ;;  %906 = vmatprep.subr.bf16.mxu1 %v3473_v36 }
  0xab   :  { %864 = vmatpush1.bf16.msra.mxu0 %v3460_v32  ;;  %907 = vmatpush1.bf16.msra.mxu1 %v3497_v40 }
  0xac   :  { %865 = vmatprep.subr.bf16.mxu0 %v3469_v35  ;;  %908 = vmatprep.subr.bf16.mxu1 %v3501_v43 }
  0xaf   :  { %866 = vmatpush1.bf16.msra.mxu0 %v3475_v37  ;;  %909 = vmatpush1.bf16.msra.mxu1 %v3503_v44 }
  0xb0   :  { %1020 = vmatprep.subr.bf16.mxu0 %v3382_v6  ;;  %1063 = vmatprep.subr.bf16.mxu1 %v3399_v11 }
 0x112   :  { %v3572_v56 = vpop.f32.mrf.mxu0  ;;  %v3574_v57 = vpop.f32.mrf.mxu1 }
 0x114   :  { %v3576_v58 = vpop.f32.mrf.mxu0  ;;  %v3578_v59 = vpop.f32.mrf.mxu1 }
 0x116   :  { %v3583_v61 = vpop.f32.mrf.mxu0  ;;  %v3585_v62 = vpop.f32.mrf.mxu1 }
 0x118   :  { %v3588_v1 = vpop.f32.mrf.mxu0  ;;  %v3590_v2 = vpop.f32.mrf.mxu1 }
 0x11a   :  { %v3593_v3 = vpop.f32.mrf.mxu0  ;;  %v3595_v4 = vpop.f32.mrf.mxu1 }
 0x11c   :  { %v3598_v13 = vpop.f32.mrf.mxu0  ;;  %v3600_v22 = vpop.f32.mrf.mxu1 }
 0x11d   :  { %4315 = vst [vmem:[#allocation21_spill] sm:$0xff] %v3600_v22 }
 0x11e   :  { %v3603_v31 = vpop.f32.mrf.mxu0  ;;  %v3605_v38 = vpop.f32.mrf.mxu1 }
 0x120   :  { %v3608_v42 = vpop.f32.mrf.mxu0  ;;  %v3610_v45 = vpop.f32.mrf.mxu1 }
 0x121   :  { %4316 = vst [vmem:[#allocation22_spill] sm:$0xff] %v3610_v45 }
 0x122   :  { %v3613_v46 = vpop.f32.mrf.mxu0  ;;  %v3615_v47 = vpop.f32.mrf.mxu1 }
 0x123   :  { %4317 = vst [vmem:[#allocation23_spill] sm:$0xff] %v3613_v46  ;;  %4318 = vst [vmem:[#allocation24_spill] sm:$0xff] %v3615_v47 }
 0x124   :  { %v3618_v49 = vpop.f32.mrf.mxu0  ;;  %v3620_v50 = vpop.f32.mrf.mxu1 }
 0x125   :  { %4319 = vst [vmem:[#allocation25_spill] sm:$0xff] %v3618_v49  ;;  %4320 = vst [vmem:[#allocation26_spill] sm:$0xff] %v3620_v50 }
 0x126   :  { %v3623_v51 = vpop.f32.mrf.mxu0  ;;  %v3625_v52 = vpop.f32.mrf.mxu1 }
 0x127   :  { %4321 = vst [vmem:[#allocation27_spill] sm:$0xff] %v3623_v51  ;;  %4322 = vst [vmem:[#allocation28_spill] sm:$0xff] %v3625_v52 }
 0x128   :  { %v3628_v54 = vpop.f32.mrf.mxu0  ;;  %v3630_v55 = vpop.f32.mrf.mxu1 }
 0x129   :  { %4323 = vst [vmem:[#allocation29_spill] sm:$0xff] %v3628_v54  ;;  %4324 = vst [vmem:[#allocation30_spill] sm:$0xff] %v3630_v55  ;;  %v2020_v55 = vsel %vm2596_vm1, 1, %v4311_v0 }
 0x12a   :  { %v3633_v60 = vpop.f32.mrf.mxu0  ;;  %v3635_v63 = vpop.f32.mrf.mxu1  ;;  %2025 = vperm.xlu1 %2709, %v2020_v55  }
 0x12b   :  { %4325 = vst [vmem:[#allocation31_spill] sm:$0xff] %v3633_v60  ;;  %4326 = vst [vmem:[#allocation32_spill] sm:$0xff] %v3635_v63 }
 0x12c   :  { %v3638_v41 = vpop.f32.mrf.mxu0  ;;  %v3640_v50 = vpop.f32.mrf.mxu1 }
 0x12d   :  { %4327 = vst [vmem:[#allocation33_spill] sm:$0xff] %v3638_v41  ;;  %4328 = vst [vmem:[#allocation34_spill] sm:$0xff] %v3640_v50 }
 0x12e   :  { %v3643_v48 = vpop.f32.mrf.mxu0  ;;  %v3645_v52 = vpop.f32.mrf.mxu1 }
 0x12f   :  { %4329 = vst [vmem:[#allocation35_spill] sm:$0xff] %v3643_v48  ;;  %4330 = vst [vmem:[#allocation36_spill] sm:$0xff] %v3645_v52 }
 0x130   :  { %v3648_v47 = vpop.f32.mrf.mxu0  ;;  %v3650_v60 = vpop.f32.mrf.mxu1 }
 0x131   :  { %4331 = vst [vmem:[#allocation37_spill] sm:$0xff] %v3648_v47  ;;  %4332 = vst [vmem:[#allocation38_spill] sm:$0xff] %v3650_v60 }
 0x132   :  { %v3652_v53 = vpop.f32.mrf.mxu0  ;;  %v3654_v63 = vpop.f32.mrf.mxu1 }
 0x133   :  { %4333 = vst [vmem:[#allocation39_spill] sm:$0xff] %v3652_v53  ;;  %4334 = vst [vmem:[#allocation40_spill] sm:$0xff] %v3654_v63 }
 0x134   :  { %v3656_v41 = vpop.f32.mrf.mxu0  ;;  %v3658_v50 = vpop.f32.mrf.mxu1 }
 0x135   :  { %4335 = vst [vmem:[#allocation41_spill] sm:$0xff] %v3656_v41  ;;  %4336 = vst [vmem:[#allocation42_spill] sm:$0xff] %v3658_v50 }
 0x136   :  { %v3660_v39 = vpop.f32.mrf.mxu0  ;;  %v3662_v48 = vpop.f32.mrf.mxu1 }
 0x137   :  { %4337 = vst [vmem:[#allocation43_spill] sm:$0xff] %v3660_v39  ;;  %4338 = vst [vmem:[#allocation44_spill] sm:$0xff] %v3662_v48 }
 0x138   :  { %v3664_v5 = vpop.f32.mrf.mxu0  ;;  %v3666_v0 = vpop.f32.mrf.mxu1 }
 0x139   :  { %4339 = vst [vmem:[#allocation45_spill] sm:$0xff] %v3664_v5  ;;  %4340 = vst [vmem:[#allocation46_spill] sm:$0xff] %v3666_v0 }
 0x13a   :  { %v3668_v52 = vpop.f32.mrf.mxu0  ;;  %v3670_v60 = vpop.f32.mrf.mxu1 }
 0x13b   :  { %4341 = vst [vmem:[#allocation47_spill] sm:$0xff] %v3668_v52  ;;  %4342 = vst [vmem:[#allocation48_spill] sm:$0xff] %v3670_v60  ;;  %v757_v60 = vlaneseq }
 0x13c   :  { %v3672_v53 = vpop.f32.mrf.mxu0  ;;  %v3674_v63 = vpop.f32.mrf.mxu1 }
 0x13d   :  { %4343 = vst [vmem:[#allocation49_spill] sm:$0xff] %v3672_v53  ;;  %4344 = vst [vmem:[#allocation50_spill] sm:$0xff] %v3674_v63 }
 0x13e   :  { %v3676_v55 = vpop.f32.mrf.mxu0  ;;  %v3678_v41 = vpop.f32.mrf.mxu1 }
 0x13f   :  { %4345 = vst [vmem:[#allocation51_spill] sm:$0xff] %v3676_v55  ;;  %4346 = vst [vmem:[#allocation52_spill] sm:$0xff] %v3678_v41 }
 0x140   :  { %v3680_v50 = vpop.f32.mrf.mxu0  ;;  %v3682_v39 = vpop.f32.mrf.mxu1 }
 0x141   :  { %4347 = vst [vmem:[#allocation53_spill] sm:$0xff] %v3680_v50  ;;  %4348 = vst [vmem:[#allocation54_spill] sm:$0xff] %v3682_v39  ;;  %v3700_v50 = vshrl.u32 %v757_v60, 7 }
 0x142   :  { %v3684_v48 = vpop.f32.mrf.mxu0  ;;  %v3686_v5 = vpop.f32.mrf.mxu1 }
 0x143   :  { %4349 = vst [vmem:[#allocation55_spill] sm:$0xff] %v3684_v48  ;;  %4350 = vst [vmem:[#allocation56_spill] sm:$0xff] %v3686_v5  ;;  %v4314_v60 = vsub.s32 1, %v3700_v50 }
 0x144   :  { %v3688_v0 = vpop.f32.mrf.mxu0  ;;  %v3690_v52 = vpop.f32.mrf.mxu1 }
 0x145   :  { %4351 = vst [vmem:[#allocation57_spill] sm:$0xff] %v3688_v0  ;;  %4352 = vst [vmem:[#allocation58_spill] sm:$0xff] %v3690_v52  ;;  %v4313_v52 = vsub.s32 0, %v3700_v50 }
 0x146   :  { %v3692_v53 = vpop.f32.mrf.mxu0  ;;  %v3694_v63 = vpop.f32.mrf.mxu1 }
 0x147   :  { %4353 = vst [vmem:[#allocation59_spill] sm:$0xff] %v3692_v53  ;;  %4354 = vst [vmem:[#allocation60_spill] sm:$0xff] %v3694_v63 }
 0x148   :  { %v3696_v55 = vpop.f32.mrf.mxu0  ;;  %v3698_v41 = vpop.f32.mrf.mxu1 }
 0x149   :  { %4355 = vst [vmem:[#allocation61_spill] sm:$0xff] %v3696_v55  ;;  %4356 = vst [vmem:[#allocation62_spill] sm:$0xff] %v3698_v41  ;;  %v463_v41 = vld [vmem:[%s4304_s5] sm:$0xf] }
 0x14a   :  { %v3702_v39 = vpop.f32.mrf.mxu0  ;;  %v3704_v48 = vpop.f32.mrf.mxu1 }
 0x14b   :  { %4357 = vst [vmem:[#allocation63_spill] sm:$0xff] %v3702_v39  ;;  %4358 = vst [vmem:[#allocation64_spill] sm:$0xff] %v3704_v48  ;;  %v3725_v48 = vrot.slane %v463_v41, %v4313_v52 }
 0x14c   :  { %v3706_v5 = vpop.f32.mrf.mxu0  ;;  %v3708_v0 = vpop.f32.mrf.mxu1 }
 0x14d   :  { %4359 = vst [vmem:[#allocation65_spill] sm:$0xff] %v3706_v5  ;;  %4360 = vst [vmem:[#allocation66_spill] sm:$0xff] %v3708_v0 }
 0x14e   :  { %v3711_v47 = vpop.f32.mrf.mxu0  ;;  %v3713_v53 = vpop.f32.mrf.mxu1 }
 0x14f   :  { %4361 = vst [vmem:[#allocation67_spill] sm:$0xff] %v3711_v47  ;;  %4362 = vst [vmem:[#allocation68_spill] sm:$0xff] %v3713_v53  ;;  %v3730_v53 = vrot.slane %v463_v41, %v4314_v60 }
 0x150   :  { %v3719_v63 = vpop.f32.mrf.mxu0  ;;  %v3721_v39 = vpop.f32.mrf.mxu1 }
 0x151   :  { %4363 = vst [vmem:[#allocation69_spill] sm:$0xff] %v3719_v63  ;;  %4364 = vst [vmem:[#allocation70_spill] sm:$0xff] %v3721_v39  ;;  %v767_v39 = vsub.s32 2, %v3700_v50 }
 0x152   :  { %v696_v0 = vpop.f32.mrf.mxu0  ;;  %v739_v54 = vpop.f32.mrf.mxu1 }
 0x153   :  { %v748_v5 = vadd.f32 %v696_v0, %v3572_v56 }
 0x154   :  { %v698_v47 = vpop.f32.mrf.mxu0  ;;  %v741_v56 = vpop.f32.mrf.mxu1 }
 0x155   :  { %v777_v55 = vadd.f32 %v3725_v48, %v748_v5  ;;  %v749_v51 = vadd.f32 %v698_v47, %v3576_v58  ;;  %v750_v5 = vadd.f32 %v739_v54, %v3574_v57  ;;  %v3742_v58 = vrot.slane %v463_v41, %v767_v39 }
 0x156   :  { %v700_v63 = vpop.f32.mrf.mxu0 }
 0x157   :  { %v2533_v49 = vmul.f32 -1.442695, %v777_v55  ;;  %v778_v52 = vadd.f32 %v3730_v53, %v749_v51  ;;  %v752_v46 = vadd.f32 %v700_v63, %v3583_v61  ;;  %v771_v51 = vsub.s32 3, %v3700_v50  ;;  %v743_v63 = vpop.f32.mrf.mxu1 }
 0x158   :  { %v702_v45 = vpop.f32.mrf.mxu0 }
 0x159   :  { %2795 = vpow2.f32 %v2533_v49  ;;  %v2534_v0 = vmul.f32 -1.442695, %v778_v52  ;;  %v753_v60 = vadd.f32 %v702_v45, %v3588_v1  ;;  %v781_v22 = vadd.f32 %v3725_v48, %v752_v46  ;;  %v745_v46 = vpop.f32.mrf.mxu1 }
 0x15a   :  { %v779_v52 = vadd.f32 %v3742_v58, %v750_v5  ;;  %v751_v1 = vadd.f32 %v741_v56, %v3578_v59  ;;  %v3750_v57 = vrot.slane %v463_v41, %v771_v51  ;;  %v754_v45 = vadd.f32 %v743_v63, %v3585_v62 }
 0x15b   :  { %2797 = vpow2.f32 %v2534_v0  ;;  %v782_v47 = vadd.f32 %v3730_v53, %v753_v60  ;;  %v2536_v61 = vmul.f32 -1.442695, %v781_v22  ;;  %v755_v22 = vadd.f32 %v745_v46, %v3590_v2 }
 0x15c   :  { %v2535_v54 = vmul.f32 -1.442695, %v779_v52  ;;  %v780_v55 = vadd.f32 %v3750_v57, %v751_v1  ;;  %v783_v60 = vadd.f32 %v3742_v58, %v754_v45 }
 0x15d   :  { %v2537_v49 = vmul.f32 -1.442695, %v782_v47  ;;  %2799 = vpow2.f32 %v2536_v61  ;;  %v784_v59 = vadd.f32 %v3750_v57, %v755_v22 }
 0x15e   :  { %v2538_v56 = vmul.f32 -1.442695, %v783_v60 }
 0x15f   :  { %2801 = vpow2.f32 %v2537_v49 }
 0x160   :  { %2803 = vpow2.f32 %v2535_v54 }
 0x161   :  { %2805 = vtanh.f32 %v780_v55 }
 0x166   :  { %v2796_v0 = vpop.eup %2795 }
 0x167   :  { %v803_v47 = vadd.f32 1.0, %v2796_v0 }
 0x168   :  { %v2798_v5 = vpop.eup %2797 }
 0x169   :  { %2807 = vrcp.f32 %v803_v47  ;;  %v804_v41 = vadd.f32 1.0, %v2798_v5 }
 0x16a   :  { %v2800_v61 = vpop.eup %2799 }
 0x16b   :  { %2809 = vrcp.f32 %v804_v41  ;;  %v806_v62 = vadd.f32 1.0, %v2800_v61 }
 0x16c   :  { %2811 = vtanh.f32 %v784_v59  ;;  %v2802_v63 = vpop.eup %2801 }
 0x16d   :  { %2813 = vpow2.f32 %v2538_v56  ;;  %v807_v2 = vadd.f32 1.0, %v2802_v63  ;;  %v2804_v49 = vpop.eup %2803 }
 0x16e   :  { %2815 = vrcp.f32 %v806_v62  ;;  %v2806_v52 = vpop.eup %2805  ;;  %v805_v54 = vadd.f32 1.0, %v2804_v49 }
 0x16f   :  { %2817 = vrcp.f32 %v807_v2  ;;  %v3763_v2 = vpop.permute.xlu0 %839 }
 0x170   :  { %2819 = vrcp.f32 %v805_v54  ;;  %vm844_vm2 = vcmp.eq.s32.totalorder %v3763_v2, 1  ;;  %v3856_v2 = vld [vmem:[#allocation9 + $0xe8] ss:$16 sps:$4 sm:$0xff]  }
 0x176   :  { %v2808_v1 = vpop.eup %2807 }
 0x177   :  { %v825_v45 = vmul.f32 %v2808_v1, %v2806_v52 }
 0x178   :  { %v2810_v46 = vpop.eup %2809 }
 0x179   :  { %v2812_v55 = vpop.eup %2811  ;;  %v823_v22 = vmul.f32 0.0, %v2810_v46  ;;  %v3769_v46 = vpop.permute.xlu0 %842 }
 0x17a   :  { %v2814_v0 = vpop.eup %2813  ;;  %vm845_vm3 = vcmp.eq.s32.totalorder %v3769_v46, 1  ;;  %v3867_v46 = vld [vmem:[#allocation9 + $0xc0] ss:$16 sps:$4 sm:$0xff]  }
 0x17b   :  { %v2816_v47 = vpop.eup %2815  ;;  %v3757_v60 = vadd.f32 %v825_v45, %v823_v22  ;;  %v808_v41 = vadd.f32 1.0, %v2814_v0  ;;  %vm2627_vm4 = vmpackc.low %vm845_vm3, %vm844_vm2 }
 0x17c   :  { %v826_v5 = vmul.f32 %v2816_v47, %v2812_v55  ;;  %v2818_v59 = vpop.eup %2817  ;;  %v4365_v55 = vmov 0   ;;  %v4366_v47 = vld [vmem:[#allocation21_spill] sm:$0xff] }
 0x17d   :  { %2821 = vtanh.f32 %v3757_v60  ;;  %v824_v56 = vmul.f32 0.0, %v2818_v59  ;;  %v2820_v62 = vpop.eup %2819 }
 0x17e   :  { %2823 = vrcp.f32 %v808_v41 }
 0x17f   :  { %v3760_v61 = vadd.f32 %v826_v5, %v824_v56 }
 0x181   :  { %2825 = vtanh.f32 %v3760_v61 }
 0x18a   :  { %v2822_v63 = vpop.eup %2821 }
 0x18b   :  { %v3765_v49 = vmul.f32 %v2822_v63, %v2820_v62  ;;  %v2824_v52 = vpop.eup %2823 }
 0x18e   :  { %v2826_v1 = vpop.eup %2825 }
 0x18f   :  { %v3767_v45 = vmul.f32 %v2826_v1, %v2824_v52 }
 0x191   :  { %v2628_v54 = vpack.c.bf16 %v3767_v45, %v3765_v49 }
 0x193   :  { %2629 = vmatmul.mubr.msk.bf16.vlgmr.msra.gmra.mxu0 %vm2627_vm4, %v2628_v54  ;;  %2632 = vmatmul.mubr.msk.bf16.vlgmr.msra.gmra.mxu1 %vm2627_vm4, %v2628_v54 }
 0x194   :  { %1021 = vmatpush1.bf16.msra.mxu0 %v3384_v7  ;;  %1064 = vmatpush1.bf16.msra.mxu1 %v3401_v12 }
 0x195   :  { %1022 = vmatprep.subr.bf16.mxu0 %v3387_v8  ;;  %1065 = vmatprep.subr.bf16.mxu1 %v3411_v16 }
 0x196   :  { %1052 = vmatprep.mubr.bf16.mxu0 %v4365_v55  ;;  %1095 = vmatprep.mubr.bf16.mxu1 %v4365_v55 }
 0x198   :  { %1023 = vmatpush1.bf16.msra.mxu0 %v3393_v9  ;;  %1066 = vmatpush1.bf16.msra.mxu1 %v3413_v17 }
 0x199   :  { %1024 = vmatprep.subr.bf16.mxu0 %v3397_v10  ;;  %1067 = vmatprep.subr.bf16.mxu1 %v3425_v20 }
 0x19c   :  { %1025 = vmatpush1.bf16.msra.mxu0 %v3404_v14  ;;  %1068 = vmatpush1.bf16.msra.mxu1 %v3429_v21 }
 0x19d   :  { %1026 = vmatprep.subr.bf16.mxu0 %v3409_v15  ;;  %1069 = vmatprep.subr.bf16.mxu1 %v3437_v25 }
 0x1a0   :  { %1027 = vmatpush1.bf16.msra.mxu0 %v3419_v18  ;;  %1070 = vmatpush1.bf16.msra.mxu1 %v3441_v26 }
 0x1a1   :  { %1028 = vmatprep.subr.bf16.mxu0 %v3421_v19  ;;  %1071 = vmatprep.subr.bf16.mxu1 %v3447_v27 }
 0x1a4   :  { %1029 = vmatpush1.bf16.msra.mxu0 %v3432_v23  ;;  %1072 = vmatpush1.bf16.msra.mxu1 %v3457_v30 }
 0x1a5   :  { %1030 = vmatprep.subr.bf16.mxu0 %v3435_v24  ;;  %1073 = vmatprep.subr.bf16.mxu1 %v3463_v33 }
 0x1a8   :  { %1031 = vmatpush1.bf16.msra.mxu0 %v3450_v28  ;;  %1074 = vmatpush1.bf16.msra.mxu1 %v3467_v34 }
 0x1a9   :  { %1032 = vmatprep.subr.bf16.mxu0 %v3455_v29  ;;  %1075 = vmatprep.subr.bf16.mxu1 %v3473_v36 }
 0x1ac   :  { %1033 = vmatpush1.bf16.msra.mxu0 %v3460_v32  ;;  %1076 = vmatpush1.bf16.msra.mxu1 %v3497_v40 }
 0x1ad   :  { %1034 = vmatprep.subr.bf16.mxu0 %v3469_v35  ;;  %1077 = vmatprep.subr.bf16.mxu1 %v3501_v43 }
 0x1b0   :  { %1035 = vmatpush1.bf16.msra.mxu0 %v3475_v37  ;;  %1078 = vmatpush1.bf16.msra.mxu1 %v3503_v44 }
 0x1b1   :  { %1189 = vmatprep.subr.bf16.mxu0 %v3382_v6  ;;  %1232 = vmatprep.subr.bf16.mxu1 %v3399_v11 }
 0x253   :  { %v885_v7 = vpop.f32.mrf.mxu0  ;;  %v928_v14 = vpop.f32.mrf.mxu1 }
 0x254   :  { %v937_v8 = vadd.f32 %v885_v7, %v3593_v3  ;;  %v939_v24 = vadd.f32 %v928_v14, %v3595_v4  ;;  %v4367_v4 = vld [vmem:[#allocation22_spill] sm:$0xff] }
 0x255   :  { %v887_v9 = vpop.f32.mrf.mxu0  ;;  %v930_v20 = vpop.f32.mrf.mxu1 }
 0x256   :  { %v945_v10 = vadd.f32 %v937_v8, %v3725_v48  ;;  %v938_v12 = vadd.f32 %v887_v9, %v3598_v13  ;;  %v947_v0 = vadd.f32 %v939_v24, %v3742_v58  ;;  %v940_v5 = vadd.f32 %v930_v20, %v4366_v47 }
 0x257   :  { %v889_v15 = vpop.f32.mrf.mxu0  ;;  %v932_v22 = vpop.f32.mrf.mxu1 }
 0x258   :  { %v2541_v16 = vmul.f32 -1.442695, %v945_v10  ;;  %v946_v17 = vadd.f32 %v938_v12, %v3730_v53  ;;  %v941_v18 = vadd.f32 %v889_v15, %v3603_v31  ;;  %v943_v31 = vadd.f32 %v932_v22, %v3605_v38 }
 0x259   :  { %v891_v19 = vpop.f32.mrf.mxu0  ;;  %v934_v59 = vpop.f32.mrf.mxu1  ;;  %v948_v62 = vadd.f32 %v940_v5, %v3750_v57  ;;  %v849_v22 = vsel %vm845_vm3, %v3760_v61, 0.0  ;;  %v846_v61 = vsel %vm844_vm2, %v3765_v49, 0.0  ;;  %v3859_v49 = vld [vmem:[#allocation9 + $0xc4] ss:$16 sps:$4 sm:$0xff]  }
 0x25a   :  { %2827 = vpow2.f32 %v2541_v16  ;;  %v2542_v6 = vmul.f32 -1.442695, %v946_v17  ;;  %v942_v11 = vadd.f32 %v891_v19, %v3608_v42  ;;  %v949_v21 = vadd.f32 %v941_v18, %v3725_v48 }
 0x25b   :  { %v2543_v42 = vmul.f32 -1.442695, %v947_v0  ;;  %v951_v41 = vadd.f32 %v943_v31, %v3742_v58  ;;  %v944_v52 = vadd.f32 %v934_v59, %v4367_v4  ;;  %v848_v18 = vsel %vm844_vm2, %v3757_v60, 0.0 }
 0x25c   :  { %2829 = vpow2.f32 %v2542_v6  ;;  %v950_v23 = vadd.f32 %v942_v11, %v3730_v53  ;;  %v2544_v3 = vmul.f32 -1.442695, %v949_v21  ;;  %v1009_v6 = vpop.permute.xlu1 %1008 }
 0x25d   :  { %v2546_v7 = vmul.f32 -1.442695, %v951_v41  ;;  %v952_v38 = vadd.f32 %v944_v52, %v3750_v57  ;;  %vm1013_vm5 = vcmp.eq.s32.totalorder %v1009_v6, 1  ;;  %v3901_v6 = vld [vmem:[#allocation9 + $0x44] ss:$16 sps:$4 sm:$0xff]  }
 0x25e   :  { %v2545_v13 = vmul.f32 -1.442695, %v950_v23  ;;  %2831 = vpow2.f32 %v2544_v3 }
 0x260   :  { %2833 = vpow2.f32 %v2545_v13  ;;  %v1012_v60 = vpop.permute.xlu1 %1011 }
 0x261   :  { %2835 = vpow2.f32 %v2543_v42  ;;  %vm1014_vm6 = vcmp.eq.s32.totalorder %v1012_v60, 1 }
 0x267   :  { %v2828_v56 = vpop.eup %2827 }
 0x268   :  { %v971_v63 = vadd.f32 1.0, %v2828_v56 }
 0x269   :  { %v2830_v1 = vpop.eup %2829 }
 0x26a   :  { %2837 = vrcp.f32 %v971_v63  ;;  %v972_v54 = vadd.f32 1.0, %v2830_v1 }
 0x26b   :  { %2839 = vtanh.f32 %v948_v62  ;;  %v2832_v8 = vpop.eup %2831 }
 0x26c   :  { %2841 = vrcp.f32 %v972_v54  ;;  %v974_v9 = vadd.f32 1.0, %v2832_v8  ;;  %v847_v54 = vsel %vm845_vm3, %v3767_v45, 0.0  ;;  %v3862_v45 = vld [vmem:[#allocation9 + $0xcc] ss:$16 sps:$4 sm:$0xff]  }
 0x26d   :  { %v2834_v10 = vpop.eup %2833  ;;  %2843 = vpow2.f32 %v2546_v7 }
 0x26e   :  { %2845 = vrcp.f32 %v974_v9  ;;  %v975_v12 = vadd.f32 1.0, %v2834_v10  ;;  %v2836_v14 = vpop.eup %2835  ;;  %v3870_v9 = vld [vmem:[#allocation9 + $0xc8] ss:$16 sps:$4 sm:$0xff]   ;;  %v3873_v10 = vld [vmem:[#allocation9 + $0xa4] ss:$16 sps:$4 sm:$0xff]  }
 0x26f   :  { %2847 = vtanh.f32 %v952_v38  ;;  %v973_v19 = vadd.f32 1.0, %v2836_v14  ;;  %v3853_v38 = vld [vmem:[#allocation9 + $0xe0] ss:$16 sps:$4 sm:$0xff]  }
 0x270   :  { %2849 = vrcp.f32 %v975_v12  ;;  %v3876_v12 = vld [vmem:[#allocation9 + $0xac] ss:$16 sps:$4 sm:$0xff]   ;;  %v3879_v14 = vld [vmem:[#allocation9 + $0xa0] ss:$16 sps:$4 sm:$0xff]  }
 0x271   :  { %2851 = vrcp.f32 %v973_v19  ;;  %v3897_v19 = vld [vmem:[#allocation9 + $0x60] ss:$16 sps:$4 sm:$0xff]  }
 0x277   :  { %v2838_v15 = vpop.eup %2837 }
 0x278   :  { %v2840_v16 = vpop.eup %2839 }
 0x279   :  { %v2842_v17 = vpop.eup %2841  ;;  %v993_v20 = vmul.f32 %v2840_v16, %v2838_v15  ;;  %v3882_v15 = vld [vmem:[#allocation9 + $0xa8] ss:$16 sps:$4 sm:$0xff]   ;;  %v3885_v16 = vld [vmem:[#allocation9 + $0x84] ss:$16 sps:$4 sm:$0xff]  }
 0x27a   :  { %v991_v11 = vmul.f32 %v2842_v17, %v848_v18  ;;  %v2844_v21 = vpop.eup %2843  ;;  %v3889_v17 = vld [vmem:[#allocation9 + $0x80] ss:$16 sps:$4 sm:$0xff]  }
 0x27b   :  { %v2846_v23 = vpop.eup %2845  ;;  %v976_v0 = vadd.f32 1.0, %v2844_v21  ;;  %v4371_v21 = vld [vmem:[#allocation29_spill] sm:$0xff] }
 0x27c   :  { %v995_v24 = vadd.f32 %v993_v20, %v991_v11  ;;  %v2848_v3 = vpop.eup %2847 }
 0x27d   :  { %v2850_v13 = vpop.eup %2849  ;;  %v994_v5 = vmul.f32 %v2848_v3, %v2846_v23 }
 0x27e   :  { %2853 = vtanh.f32 %v995_v24  ;;  %v3836_v31 = vsel %vm1013_vm5, %v995_v24, %v848_v18  ;;  %v992_v47 = vmul.f32 %v2850_v13, %v849_v22  ;;  %v2852_v41 = vpop.eup %2851  ;;  %v3893_v18 = vld [vmem:[#allocation9 + $0x64] ss:$16 sps:$4 sm:$0xff]  }
 0x27f   :  { %2855 = vrcp.f32 %v976_v0 }
 0x280   :  { %v996_v42 = vadd.f32 %v994_v5, %v992_v47  ;;  %v4372_v47 = vld [vmem:[#allocation24_spill] sm:$0xff] }
 0x282   :  { %2857 = vtanh.f32 %v996_v42  ;;  %v3838_v59 = vsel %vm1014_vm6, %v996_v42, %v849_v22  ;;  %v4373_v42 = vld [vmem:[#allocation28_spill] sm:$0xff] }
 0x28b   :  { %v2854_v56 = vpop.eup %2853 }
 0x28c   :  { %v999_v62 = vmul.f32 %v2854_v56, %v2852_v41  ;;  %v2856_v4 = vpop.eup %2855  ;;  %v4374_v56 = vld [vmem:[#allocation26_spill] sm:$0xff] }
 0x28e   :  { %v3844_v63 = vsel %vm1013_vm5, %v999_v62, %v846_v61 }
 0x28f   :  { %v2858_v52 = vpop.eup %2857 }
 0x290   :  { %v1000_v1 = vmul.f32 %v2858_v52, %v2856_v4 }
 0x292   :  { %v3849_v7 = vsel %vm1014_vm6, %v1000_v1, %v847_v54 }
 0x293   :  { %v1019_v8 = vpack.c.bf16 %v3849_v7, %v3844_v63 }
 0x295   :  { %1053 = vmatmul.mubr.bf16.vlgmr.msra.gmra.mxu0 %v1019_v8  ;;  %1096 = vmatmul.mubr.bf16.vlgmr.msra.gmra.mxu1 %v1019_v8 }
 0x296   :  { %1190 = vmatpush1.bf16.msra.mxu0 %v3853_v38  ;;  %1233 = vmatpush1.bf16.msra.mxu1 %v3856_v2 }
 0x297   :  { %1191 = vmatprep.subr.bf16.mxu0 %v3859_v49  ;;  %1234 = vmatprep.subr.bf16.mxu1 %v3862_v45 }
 0x298   :  { %1221 = vmatprep.mubr.bf16.mxu0 %v4365_v55  ;;  %1264 = vmatprep.mubr.bf16.mxu1 %v4365_v55 }
 0x29a   :  { %1192 = vmatpush1.bf16.msra.mxu0 %v3867_v46  ;;  %1235 = vmatpush1.bf16.msra.mxu1 %v3870_v9 }
 0x29b   :  { %1193 = vmatprep.subr.bf16.mxu0 %v3873_v10  ;;  %1236 = vmatprep.subr.bf16.mxu1 %v3876_v12 }
 0x29e   :  { %1194 = vmatpush1.bf16.msra.mxu0 %v3879_v14  ;;  %1237 = vmatpush1.bf16.msra.mxu1 %v3882_v15 }
 0x29f   :  { %1195 = vmatprep.subr.bf16.mxu0 %v3885_v16  ;;  %1238 = vmatprep.subr.bf16.mxu1 %v3437_v25  ;;  %v3915_v25 = vld [vmem:[#allocation9 + $0xe4] ss:$16 sps:$4 sm:$0xff]  }
 0x2a2   :  { %1196 = vmatpush1.bf16.msra.mxu0 %v3889_v17  ;;  %1239 = vmatpush1.bf16.msra.mxu1 %v3441_v26  ;;  %v3918_v26 = vld [vmem:[#allocation9 + $0xec] ss:$16 sps:$4 sm:$0xff]  }
 0x2a3   :  { %1197 = vmatprep.subr.bf16.mxu0 %v3893_v18  ;;  %1240 = vmatprep.subr.bf16.mxu1 %v3447_v27 }
 0x2a6   :  { %1198 = vmatpush1.bf16.msra.mxu0 %v3897_v19  ;;  %1241 = vmatpush1.bf16.msra.mxu1 %v3457_v30 }
 0x2a7   :  { %1199 = vmatprep.subr.bf16.mxu0 %v3901_v6  ;;  %1242 = vmatprep.subr.bf16.mxu1 %v3463_v33  ;;  %v4369_v33 = vld [vmem:[#allocation25_spill] sm:$0xff] }
 0x2aa   :  { %1200 = vmatpush1.bf16.msra.mxu0 %v3450_v28  ;;  %1243 = vmatpush1.bf16.msra.mxu1 %v3467_v34  ;;  %v4368_v28 = vld [vmem:[#allocation23_spill] sm:$0xff] }
 0x2ab   :  { %1201 = vmatprep.subr.bf16.mxu0 %v3455_v29  ;;  %1244 = vmatprep.subr.bf16.mxu1 %v3473_v36 }
 0x2ae   :  { %1202 = vmatpush1.bf16.msra.mxu0 %v3460_v32  ;;  %1245 = vmatpush1.bf16.msra.mxu1 %v3497_v40 }
 0x2af   :  { %1203 = vmatprep.subr.bf16.mxu0 %v3469_v35  ;;  %1246 = vmatprep.subr.bf16.mxu1 %v3501_v43  ;;  %v4370_v43 = vld [vmem:[#allocation27_spill] sm:$0xff] }
 0x2b2   :  { %1204 = vmatpush1.bf16.msra.mxu0 %v3475_v37  ;;  %1247 = vmatpush1.bf16.msra.mxu1 %v3503_v44 }
 0x2b3   :  { %1358 = vmatprep.subr.bf16.mxu0 %v3915_v25  ;;  %1401 = vmatprep.subr.bf16.mxu1 %v3918_v26 }
 0x355   :  { %v1054_v27 = vpop.f32.mrf.mxu0  ;;  %v1097_v35 = vpop.f32.mrf.mxu1 }
 0x356   :  { %v1106_v29 = vadd.f32 %v1054_v27, %v4368_v28  ;;  %v1108_v5 = vadd.f32 %v1097_v35, %v4372_v47  ;;  %v4375_v27 = vld [vmem:[#allocation30_spill] sm:$0xff] }
 0x357   :  { %v1056_v30 = vpop.f32.mrf.mxu0  ;;  %v1099_v24 = vpop.f32.mrf.mxu1 }
 0x358   :  { %v1114_v32 = vadd.f32 %v1106_v29, %v3725_v48  ;;  %v1107_v34 = vadd.f32 %v1056_v30, %v4369_v33  ;;  %v1109_v62 = vadd.f32 %v1099_v24, %v4374_v56  ;;  %v1116_v61 = vadd.f32 %v1108_v5, %v3742_v58 }
 0x359   :  { %v1058_v36 = vpop.f32.mrf.mxu0  ;;  %v1101_v60 = vpop.f32.mrf.mxu1 }
 0x35a   :  { %v2549_v37 = vmul.f32 -1.442695, %v1114_v32  ;;  %v1115_v40 = vadd.f32 %v1107_v34, %v3730_v53  ;;  %v1110_v44 = vadd.f32 %v1058_v36, %v4370_v43  ;;  %v1112_v41 = vadd.f32 %v1101_v60, %v4373_v42 }
 0x35b   :  { %v1060_v11 = vpop.f32.mrf.mxu0  ;;  %v1103_v4 = vpop.f32.mrf.mxu1  ;;  %v1117_v54 = vadd.f32 %v1109_v62, %v3750_v57  ;;  %v2551_v30 = vmul.f32 -1.442695, %v1116_v61 }
 0x35c   :  { %2859 = vpow2.f32 %v2549_v37  ;;  %v2550_v20 = vmul.f32 -1.442695, %v1115_v40  ;;  %v1111_v23 = vadd.f32 %v1060_v11, %v4371_v21  ;;  %v1118_v3 = vadd.f32 %v1110_v44, %v3725_v48  ;;  %v1181_v62 = vpop.permute.xlu1 %1180 }
 0x35d   :  { %v1120_v52 = vadd.f32 %v1112_v41, %v3742_v58  ;;  %v1113_v28 = vadd.f32 %v1103_v4, %v4375_v27  ;;  %vm1183_vm8 = vcmp.eq.s32.totalorder %v1181_v62, 1  ;;  %v4378_v62 = vld [vmem:[#allocation35_spill] sm:$0xff] }
 0x35e   :  { %2861 = vpow2.f32 %v2550_v20  ;;  %v1119_v13 = vadd.f32 %v1111_v23, %v3730_v53  ;;  %v2552_v22 = vmul.f32 -1.442695, %v1118_v3 }
 0x35f   :  { %v2554_v33 = vmul.f32 -1.442695, %v1120_v52  ;;  %v1121_v35 = vadd.f32 %v1113_v28, %v3750_v57 }
 0x360   :  { %v2553_v0 = vmul.f32 -1.442695, %v1119_v13  ;;  %2863 = vpow2.f32 %v2552_v22  ;;  %v1178_v13 = vpop.permute.xlu0 %1177 }
 0x361   :  { %vm1182_vm7 = vcmp.eq.s32.totalorder %v1178_v13, 1 }
 0x362   :  { %2865 = vpow2.f32 %v2553_v0 }
 0x369   :  { %v2860_v1 = vpop.eup %2859 }
 0x36a   :  { %v1140_v8 = vadd.f32 1.0, %v2860_v1 }
 0x36b   :  { %v2862_v29 = vpop.eup %2861 }
 0x36c   :  { %2867 = vrcp.f32 %v1140_v8  ;;  %v1141_v32 = vadd.f32 1.0, %v2862_v29 }
 0x36d   :  { %2869 = vtanh.f32 %v1117_v54  ;;  %v2864_v34 = vpop.eup %2863 }
 0x36e   :  { %2871 = vrcp.f32 %v1141_v32  ;;  %v1143_v36 = vadd.f32 1.0, %v2864_v34  ;;  %v3980_v32 = vld [vmem:[#allocation9 + $0x68] ss:$16 sps:$4 sm:$0xff]   ;;  %v3987_v34 = vld [vmem:[#allocation9 + $0x40] ss:$16 sps:$4 sm:$0xff]  }
 0x36f   :  { %2873 = vpow2.f32 %v2551_v30  ;;  %v2866_v37 = vpop.eup %2865 }
 0x370   :  { %2875 = vpow2.f32 %v2554_v33  ;;  %v1144_v40 = vadd.f32 1.0, %v2866_v37  ;;  %v3984_v33 = vld [vmem:[#allocation9 + $0x4c] ss:$16 sps:$4 sm:$0xff]  }
 0x371   :  { %2877 = vrcp.f32 %v1143_v36  ;;  %v3993_v36 = vld [vmem:[#allocation9 + $0x24] ss:$16 sps:$4 sm:$0xff]   ;;  %v3996_v37 = vld [vmem:[#allocation9 + $0x2c] ss:$16 sps:$4 sm:$0xff]  }
 0x372   :  { %2879 = vtanh.f32 %v1121_v35  ;;  %v3990_v35 = vld [vmem:[#allocation9 + $0x48] ss:$16 sps:$4 sm:$0xff]  }
 0x373   :  { %2881 = vrcp.f32 %v1144_v40  ;;  %v3999_v40 = vld [vmem:[#allocation9 + $0x20] ss:$16 sps:$4 sm:$0xff]  }
 0x379   :  { %v2868_v43 = vpop.eup %2867 }
 0x37a   :  { %v2870_v44 = vpop.eup %2869 }
 0x37b   :  { %v2872_v11 = vpop.eup %2871  ;;  %v1162_v23 = vmul.f32 %v2870_v44, %v2868_v43  ;;  %v4002_v43 = vld [vmem:[#allocation9 + $0x28] ss:$16 sps:$4 sm:$0xff]   ;;  %v4005_v44 = vld [vmem:[#allocation9 + $0x4] ss:$16 sps:$4 sm:$0xff]  }
 0x37c   :  { %v2874_v20 = vpop.eup %2873  ;;  %v1160_v21 = vmul.f32 %v2872_v11, %v3836_v31  ;;  %v4008_v11 = vld [vmem:[#allocation9 + $0xc] ss:$16 sps:$4 sm:$0xff]  }
 0x37d   :  { %v2876_v24 = vpop.eup %2875  ;;  %v1142_v60 = vadd.f32 1.0, %v2874_v20  ;;  %v4011_v20 = vld [vmem:[#allocation9] ss:$16 sps:$4 sm:$0xff]  }
 0x37e   :  { %v2878_v3 = vpop.eup %2877  ;;  %v1164_v22 = vadd.f32 %v1162_v23, %v1160_v21  ;;  %v1145_v5 = vadd.f32 1.0, %v2876_v24  ;;  %v4014_v21 = vld [vmem:[#allocation9 + $0x8] ss:$16 sps:$4 sm:$0xff]   ;;  %v4376_v24 = vld [vmem:[#allocation31_spill] sm:$0xff] }
 0x37f   :  { %v2880_v0 = vpop.eup %2879 }
 0x380   :  { %v2882_v47 = vpop.eup %2881  ;;  %v3940_v42 = vsel %vm1182_vm7, %v1164_v22, %v3836_v31  ;;  %2883 = vtanh.f32 %v1164_v22  ;;  %v1163_v56 = vmul.f32 %v2880_v0, %v2878_v3  ;;  %v4377_v0 = vld [vmem:[#allocation33_spill] sm:$0xff] }
 0x381   :  { %v1161_v41 = vmul.f32 %v2882_v47, %v3838_v59  ;;  %2885 = vrcp.f32 %v1142_v60 }
 0x382   :  { %2887 = vrcp.f32 %v1145_v5 }
 0x383   :  { %v1165_v61 = vadd.f32 %v1163_v56, %v1161_v41 }
 0x385   :  { %2889 = vtanh.f32 %v1165_v61  ;;  %v3944_v4 = vsel %vm1183_vm8, %v1165_v61, %v3838_v59  ;;  %v3968_v59 = vld [vmem:[#allocation9 + $0x8c] ss:$16 sps:$4 sm:$0xff]  }
 0x38d   :  { %v2884_v52 = vpop.eup %2883 }
 0x38e   :  { %v2886_v1 = vpop.eup %2885 }
 0x38f   :  { %v2888_v54 = vpop.eup %2887  ;;  %v1168_v8 = vmul.f32 %v2886_v1, %v2884_v52 }
 0x391   :  { %v3948_v28 = vsel %vm1182_vm7, %v1168_v8, %v3844_v63  ;;  %v3972_v63 = vld [vmem:[#allocation9 + $0x88] ss:$16 sps:$4 sm:$0xff]  }
 0x392   :  { %v2890_v27 = vpop.eup %2889 }
 0x393   :  { %v1169_v31 = vmul.f32 %v2890_v27, %v2888_v54  ;;  %v4379_v54 = vld [vmem:[#allocation37_spill] sm:$0xff] }
 0x395   :  { %v3951_v29 = vsel %vm1183_vm8, %v1169_v31, %v3849_v7  ;;  %v3976_v7 = vld [vmem:[#allocation9 + $0x6c] ss:$16 sps:$4 sm:$0xff]  }
 0x396   :  { %v1188_v30 = vpack.c.bf16 %v3951_v29, %v3948_v28 }
 0x398   :  { %1222 = vmatmul.mubr.bf16.vlgmr.msra.gmra.mxu0 %v1188_v30  ;;  %1265 = vmatmul.mubr.bf16.vlgmr.msra.gmra.mxu1 %v1188_v30 }
 0x399   :  { %1359 = vmatpush1.bf16.msra.mxu0 %v3853_v38  ;;  %1402 = vmatpush1.bf16.msra.mxu1 %v3856_v2 }
 0x39a   :  { %1360 = vmatprep.subr.bf16.mxu0 %v3859_v49  ;;  %1403 = vmatprep.subr.bf16.mxu1 %v3862_v45 }
 0x39b   :  { %1390 = vmatprep.mubr.bf16.mxu0 %v4365_v55  ;;  %1433 = vmatprep.mubr.bf16.mxu1 %v4365_v55 }
 0x39d   :  { %1361 = vmatpush1.bf16.msra.mxu0 %v3867_v46  ;;  %1404 = vmatpush1.bf16.msra.mxu1 %v3870_v9 }
 0x39e   :  { %1362 = vmatprep.subr.bf16.mxu0 %v3873_v10  ;;  %1405 = vmatprep.subr.bf16.mxu1 %v3876_v12 }
 0x3a1   :  { %1363 = vmatpush1.bf16.msra.mxu0 %v3879_v14  ;;  %1406 = vmatpush1.bf16.msra.mxu1 %v3882_v15 }
 0x3a2   :  { %1364 = vmatprep.subr.bf16.mxu0 %v3885_v16  ;;  %1407 = vmatprep.subr.bf16.mxu1 %v3968_v59 }
 0x3a5   :  { %1365 = vmatpush1.bf16.msra.mxu0 %v3889_v17  ;;  %1408 = vmatpush1.bf16.msra.mxu1 %v3972_v63 }
 0x3a6   :  { %1366 = vmatprep.subr.bf16.mxu0 %v3893_v18  ;;  %1409 = vmatprep.subr.bf16.mxu1 %v3976_v7 }
 0x3a9   :  { %1367 = vmatpush1.bf16.msra.mxu0 %v3897_v19  ;;  %1410 = vmatpush1.bf16.msra.mxu1 %v3980_v32 }
 0x3aa   :  { %1368 = vmatprep.subr.bf16.mxu0 %v3901_v6  ;;  %1411 = vmatprep.subr.bf16.mxu1 %v3984_v33 }
 0x3ad   :  { %1369 = vmatpush1.bf16.msra.mxu0 %v3987_v34  ;;  %1412 = vmatpush1.bf16.msra.mxu1 %v3990_v35 }
 0x3ae   :  { %1370 = vmatprep.subr.bf16.mxu0 %v3993_v36  ;;  %1413 = vmatprep.subr.bf16.mxu1 %v3996_v37 }
 0x3b1   :  { %1371 = vmatpush1.bf16.msra.mxu0 %v3999_v40  ;;  %1414 = vmatpush1.bf16.msra.mxu1 %v4002_v43 }
 0x3b2   :  { %1372 = vmatprep.subr.bf16.mxu0 %v4005_v44  ;;  %1415 = vmatprep.subr.bf16.mxu1 %v4008_v11 }
 0x3b5   :  { %1373 = vmatpush1.bf16.msra.mxu0 %v4011_v20  ;;  %1416 = vmatpush1.bf16.msra.mxu1 %v4014_v21 }
 0x3b6   :  { %1527 = vmatprep.subr.bf16.mxu0 %v3915_v25  ;;  %1570 = vmatprep.subr.bf16.mxu1 %v3918_v26 }
 0x458   :  { %v1223_v23 = vpop.f32.mrf.mxu0  ;;  %v1266_v47 = vpop.f32.mrf.mxu1 }
 0x459   :  { %v1275_v3 = vadd.f32 %v1223_v23, %v4376_v24 }
 0x45a   :  { %v1225_v13 = vpop.f32.mrf.mxu0  ;;  %v1268_v27 = vpop.f32.mrf.mxu1 }
 0x45b   :  { %v1283_v22 = vadd.f32 %v1275_v3, %v3725_v48  ;;  %v1276_v60 = vadd.f32 %v1225_v13, %v4377_v0  ;;  %v4380_v13 = vld [vmem:[#allocation32_spill] sm:$0xff] }
 0x45c   :  { %v1227_v5 = vpop.f32.mrf.mxu0  ;;  %v1270_v3 = vpop.f32.mrf.mxu1  ;;  %v4381_v0 = vld [vmem:[#allocation36_spill] sm:$0xff] }
 0x45d   :  { %v2557_v41 = vmul.f32 -1.442695, %v1283_v22  ;;  %v1284_v56 = vadd.f32 %v1276_v60, %v3730_v53  ;;  %v1279_v61 = vadd.f32 %v1227_v5, %v4378_v62  ;;  %v1277_v22 = vadd.f32 %v1266_v47, %v4380_v13  ;;  %v4382_v5 = vld [vmem:[#allocation34_spill] sm:$0xff] }
 0x45e   :  { %v1229_v52 = vpop.f32.mrf.mxu0  ;;  %v1281_v60 = vadd.f32 %v1270_v3, %v4381_v0  ;;  %v1272_v62 = vpop.f32.mrf.mxu1 }
 0x45f   :  { %2891 = vpow2.f32 %v2557_v41  ;;  %v2558_v1 = vmul.f32 -1.442695, %v1284_v56  ;;  %v1280_v8 = vadd.f32 %v1229_v52, %v4379_v54  ;;  %v1287_v31 = vadd.f32 %v1279_v61, %v3725_v48 }
 0x460   :  { %v1278_v41 = vadd.f32 %v1268_v27, %v4382_v5  ;;  %v1285_v56 = vadd.f32 %v1277_v22, %v3742_v58  ;;  %v1289_v52 = vadd.f32 %v1281_v60, %v3742_v58 }
 0x461   :  { %2893 = vpow2.f32 %v2558_v1  ;;  %v1288_v30 = vadd.f32 %v1280_v8, %v3730_v53  ;;  %v2560_v23 = vmul.f32 -1.442695, %v1287_v31  ;;  %v4383_v8 = vld [vmem:[#allocation38_spill] sm:$0xff] }
 0x462   :  { %v1286_v1 = vadd.f32 %v1278_v41, %v3750_v57  ;;  %v1282_v31 = vadd.f32 %v1272_v62, %v4383_v8 }
 0x463   :  { %v2561_v24 = vmul.f32 -1.442695, %v1288_v30  ;;  %2895 = vpow2.f32 %v2560_v23  ;;  %v2559_v23 = vmul.f32 -1.442695, %v1285_v56 }
 0x464   :  { %v1290_v27 = vadd.f32 %v1282_v31, %v3750_v57 }
 0x465   :  { %2897 = vpow2.f32 %v2561_v24  ;;  %v2562_v24 = vmul.f32 -1.442695, %v1289_v52 }
 0x46c   :  { %v2892_v61 = vpop.eup %2891 }
 0x46d   :  { %v1309_v54 = vadd.f32 1.0, %v2892_v61 }
 0x46e   :  { %v2894_v30 = vpop.eup %2893 }
 0x46f   :  { %2899 = vrcp.f32 %v1309_v54  ;;  %v1310_v47 = vadd.f32 1.0, %v2894_v30  ;;  %v1347_v54 = vpop.permute.xlu0 %1346 }
 0x470   :  { %2901 = vtanh.f32 %v1286_v1  ;;  %v2896_v3 = vpop.eup %2895  ;;  %vm1351_vm9 = vcmp.eq.s32.totalorder %v1347_v54, 1 }
 0x471   :  { %2903 = vrcp.f32 %v1310_v47  ;;  %v1312_v13 = vadd.f32 1.0, %v2896_v3 }
 0x472   :  { %2905 = vpow2.f32 %v2559_v23  ;;  %v2898_v22 = vpop.eup %2897 }
 0x473   :  { %2907 = vpow2.f32 %v2562_v24  ;;  %v1313_v0 = vadd.f32 1.0, %v2898_v22 }
 0x474   :  { %2909 = vrcp.f32 %v1312_v13  ;;  %v1350_v13 = vpop.permute.xlu1 %1349 }
 0x475   :  { %2911 = vtanh.f32 %v1290_v27  ;;  %vm1352_vm10 = vcmp.eq.s32.totalorder %v1350_v13, 1  ;;  %v4386_v13 = vld [vmem:[#allocation43_spill] sm:$0xff] }
 0x476   :  { %2913 = vrcp.f32 %v1313_v0 }
 0x47c   :  { %v2900_v60 = vpop.eup %2899 }
 0x47d   :  { %v2902_v5 = vpop.eup %2901 }
 0x47e   :  { %v2904_v41 = vpop.eup %2903  ;;  %v1331_v52 = vmul.f32 %v2902_v5, %v2900_v60 }
 0x47f   :  { %v2906_v56 = vpop.eup %2905  ;;  %v1329_v62 = vmul.f32 %v2904_v41, %v3940_v42 }
 0x480   :  { %v2908_v61 = vpop.eup %2907  ;;  %v1311_v30 = vadd.f32 1.0, %v2906_v56 }
 0x481   :  { %v2910_v1 = vpop.eup %2909  ;;  %v1333_v8 = vadd.f32 %v1331_v52, %v1329_v62  ;;  %v1314_v47 = vadd.f32 1.0, %v2908_v61 }
 0x482   :  { %v2912_v31 = vpop.eup %2911 }
 0x483   :  { %v2914_v23 = vpop.eup %2913  ;;  %v4038_v24 = vsel %vm1351_vm9, %v1333_v8, %v3940_v42  ;;  %2915 = vtanh.f32 %v1333_v8  ;;  %v1332_v27 = vmul.f32 %v2912_v31, %v2910_v1  ;;  %v4385_v31 = vld [vmem:[#allocation41_spill] sm:$0xff] }
 0x484   :  { %v1330_v3 = vmul.f32 %v2914_v23, %v3944_v4  ;;  %2917 = vrcp.f32 %v1311_v30 }
 0x485   :  { %2919 = vrcp.f32 %v1314_v47 }
 0x486   :  { %v1334_v22 = vadd.f32 %v1332_v27, %v1330_v3 }
 0x488   :  { %2921 = vtanh.f32 %v1334_v22  ;;  %v4042_v0 = vsel %vm1352_vm10, %v1334_v22, %v3944_v4 }
 0x490   :  { %v2916_v60 = vpop.eup %2915 }
 0x491   :  { %v2918_v5 = vpop.eup %2917 }
 0x492   :  { %v2920_v41 = vpop.eup %2919  ;;  %v1337_v56 = vmul.f32 %v2918_v5, %v2916_v60 }
 0x494   :  { %v4046_v52 = vsel %vm1351_vm9, %v1337_v56, %v3948_v28  ;;  %v4384_v28 = vld [vmem:[#allocation39_spill] sm:$0xff] }
 0x495   :  { %v2922_v62 = vpop.eup %2921 }
 0x496   :  { %v1338_v42 = vmul.f32 %v2922_v62, %v2920_v41  ;;  %v4387_v41 = vld [vmem:[#allocation45_spill] sm:$0xff] }
 0x498   :  { %v4049_v61 = vsel %vm1352_vm10, %v1338_v42, %v3951_v29 }
 0x499   :  { %v1357_v1 = vpack.c.bf16 %v4049_v61, %v4046_v52 }
 0x49b   :  { %1391 = vmatmul.mubr.bf16.vlgmr.msra.gmra.mxu0 %v1357_v1  ;;  %1434 = vmatmul.mubr.bf16.vlgmr.msra.gmra.mxu1 %v1357_v1 }
 0x49c   :  { %1528 = vmatpush1.bf16.msra.mxu0 %v3853_v38  ;;  %1571 = vmatpush1.bf16.msra.mxu1 %v3856_v2 }
 0x49d   :  { %1529 = vmatprep.subr.bf16.mxu0 %v3859_v49  ;;  %1572 = vmatprep.subr.bf16.mxu1 %v3862_v45 }
 0x49e   :  { %1559 = vmatprep.mubr.bf16.mxu0 %v4365_v55  ;;  %1602 = vmatprep.mubr.bf16.mxu1 %v4365_v55 }
 0x4a0   :  { %1530 = vmatpush1.bf16.msra.mxu0 %v3867_v46  ;;  %1573 = vmatpush1.bf16.msra.mxu1 %v3870_v9 }
 0x4a1   :  { %1531 = vmatprep.subr.bf16.mxu0 %v3873_v10  ;;  %1574 = vmatprep.subr.bf16.mxu1 %v3876_v12 }
 0x4a4   :  { %1532 = vmatpush1.bf16.msra.mxu0 %v3879_v14  ;;  %1575 = vmatpush1.bf16.msra.mxu1 %v3882_v15 }
 0x4a5   :  { %1533 = vmatprep.subr.bf16.mxu0 %v3885_v16  ;;  %1576 = vmatprep.subr.bf16.mxu1 %v3968_v59 }
 0x4a8   :  { %1534 = vmatpush1.bf16.msra.mxu0 %v3889_v17  ;;  %1577 = vmatpush1.bf16.msra.mxu1 %v3972_v63 }
 0x4a9   :  { %1535 = vmatprep.subr.bf16.mxu0 %v3893_v18  ;;  %1578 = vmatprep.subr.bf16.mxu1 %v3976_v7 }
 0x4ac   :  { %1536 = vmatpush1.bf16.msra.mxu0 %v3897_v19  ;;  %1579 = vmatpush1.bf16.msra.mxu1 %v3980_v32 }
 0x4ad   :  { %1537 = vmatprep.subr.bf16.mxu0 %v3901_v6  ;;  %1580 = vmatprep.subr.bf16.mxu1 %v3984_v33 }
 0x4b0   :  { %1538 = vmatpush1.bf16.msra.mxu0 %v3987_v34  ;;  %1581 = vmatpush1.bf16.msra.mxu1 %v3990_v35 }
 0x4b1   :  { %1539 = vmatprep.subr.bf16.mxu0 %v3993_v36  ;;  %1582 = vmatprep.subr.bf16.mxu1 %v3996_v37 }
 0x4b4   :  { %1540 = vmatpush1.bf16.msra.mxu0 %v3999_v40  ;;  %1583 = vmatpush1.bf16.msra.mxu1 %v4002_v43 }
 0x4b5   :  { %1541 = vmatprep.subr.bf16.mxu0 %v4005_v44  ;;  %1584 = vmatprep.subr.bf16.mxu1 %v4008_v11 }
 0x4b8   :  { %1542 = vmatpush1.bf16.msra.mxu0 %v4011_v20  ;;  %1585 = vmatpush1.bf16.msra.mxu1 %v4014_v21 }
 0x4b9   :  { %1696 = vmatprep.subr.bf16.mxu0 %v3915_v25  ;;  %1739 = vmatprep.subr.bf16.mxu1 %v3918_v26 }
 0x55b   :  { %v1392_v4 = vpop.f32.mrf.mxu0  ;;  %v1435_v23 = vpop.f32.mrf.mxu1 }
 0x55c   :  { %v1444_v29 = vadd.f32 %v1392_v4, %v4384_v28 }
 0x55d   :  { %v1394_v54 = vpop.f32.mrf.mxu0  ;;  %v1437_v62 = vpop.f32.mrf.mxu1 }
 0x55e   :  { %v1452_v8 = vadd.f32 %v1444_v29, %v3725_v48  ;;  %v1445_v30 = vadd.f32 %v1394_v54, %v4385_v31  ;;  %v4388_v54 = vld [vmem:[#allocation40_spill] sm:$0xff] }
 0x55f   :  { %v1396_v47 = vpop.f32.mrf.mxu0  ;;  %v1439_v29 = vpop.f32.mrf.mxu1  ;;  %v4389_v31 = vld [vmem:[#allocation44_spill] sm:$0xff] }
 0x560   :  { %v2565_v3 = vmul.f32 -1.442695, %v1452_v8  ;;  %v1453_v27 = vadd.f32 %v1445_v30, %v3730_v53  ;;  %v1448_v22 = vadd.f32 %v1396_v47, %v4386_v13  ;;  %v1446_v8 = vadd.f32 %v1435_v23, %v4388_v54  ;;  %v4390_v47 = vld [vmem:[#allocation42_spill] sm:$0xff] }
 0x561   :  { %v1398_v60 = vpop.f32.mrf.mxu0  ;;  %v1450_v30 = vadd.f32 %v1439_v29, %v4389_v31  ;;  %v1441_v13 = vpop.f32.mrf.mxu1 }
 0x562   :  { %2923 = vpow2.f32 %v2565_v3  ;;  %v2566_v5 = vmul.f32 -1.442695, %v1453_v27  ;;  %v1449_v56 = vadd.f32 %v1398_v60, %v4387_v41  ;;  %v1456_v42 = vadd.f32 %v1448_v22, %v3725_v48 }
 0x563   :  { %v1447_v3 = vadd.f32 %v1437_v62, %v4390_v47  ;;  %v1454_v27 = vadd.f32 %v1446_v8, %v3742_v58  ;;  %v1458_v60 = vadd.f32 %v1450_v30, %v3742_v58 }
 0x564   :  { %2925 = vpow2.f32 %v2566_v5  ;;  %v1457_v1 = vadd.f32 %v1449_v56, %v3730_v53  ;;  %v2568_v4 = vmul.f32 -1.442695, %v1456_v42  ;;  %v4391_v56 = vld [vmem:[#allocation46_spill] sm:$0xff] }
 0x565   :  { %v1455_v5 = vadd.f32 %v1447_v3, %v3750_v57  ;;  %v1451_v42 = vadd.f32 %v1441_v13, %v4391_v56 }
 0x566   :  { %v2569_v28 = vmul.f32 -1.442695, %v1457_v1  ;;  %2927 = vpow2.f32 %v2568_v4  ;;  %v2567_v4 = vmul.f32 -1.442695, %v1454_v27 }
 0x567   :  { %v1459_v62 = vadd.f32 %v1451_v42, %v3750_v57 }
 0x568   :  { %2929 = vpow2.f32 %v2569_v28  ;;  %v2570_v28 = vmul.f32 -1.442695, %v1458_v60 }
 0x56f   :  { %v2924_v22 = vpop.eup %2923 }
 0x570   :  { %v1478_v41 = vadd.f32 1.0, %v2924_v22 }
 0x571   :  { %v2926_v1 = vpop.eup %2925 }
 0x572   :  { %2931 = vrcp.f32 %v1478_v41  ;;  %v1479_v23 = vadd.f32 1.0, %v2926_v1  ;;  %v1516_v41 = vpop.permute.xlu0 %1515 }
 0x573   :  { %2933 = vtanh.f32 %v1455_v5  ;;  %v2928_v29 = vpop.eup %2927  ;;  %vm1520_vm11 = vcmp.eq.s32.totalorder %v1516_v41, 1 }
 0x574   :  { %2935 = vrcp.f32 %v1479_v23  ;;  %v1481_v54 = vadd.f32 1.0, %v2928_v29 }
 0x575   :  { %2937 = vpow2.f32 %v2567_v4  ;;  %v2930_v8 = vpop.eup %2929 }
 0x576   :  { %2939 = vpow2.f32 %v2570_v28  ;;  %v1482_v31 = vadd.f32 1.0, %v2930_v8 }
 0x577   :  { %2941 = vrcp.f32 %v1481_v54  ;;  %v1519_v54 = vpop.permute.xlu1 %1518 }
 0x578   :  { %2943 = vtanh.f32 %v1459_v62  ;;  %vm1521_vm12 = vcmp.eq.s32.totalorder %v1519_v54, 1  ;;  %v4394_v54 = vld [vmem:[#allocation51_spill] sm:$0xff] }
 0x579   :  { %2945 = vrcp.f32 %v1482_v31 }
 0x57f   :  { %v2932_v30 = vpop.eup %2931 }
 0x580   :  { %v2934_v47 = vpop.eup %2933 }
 0x581   :  { %v2936_v3 = vpop.eup %2935  ;;  %v1500_v60 = vmul.f32 %v2934_v47, %v2932_v30 }
 0x582   :  { %v2938_v27 = vpop.eup %2937  ;;  %v1498_v13 = vmul.f32 %v2936_v3, %v4038_v24 }
 0x583   :  { %v2940_v22 = vpop.eup %2939  ;;  %v1480_v1 = vadd.f32 1.0, %v2938_v27 }
 0x584   :  { %v2942_v5 = vpop.eup %2941  ;;  %v1502_v56 = vadd.f32 %v1500_v60, %v1498_v13  ;;  %v1483_v23 = vadd.f32 1.0, %v2940_v22 }
 0x585   :  { %v2944_v42 = vpop.eup %2943 }
 0x586   :  { %v2946_v4 = vpop.eup %2945  ;;  %v4106_v28 = vsel %vm1520_vm11, %v1502_v56, %v4038_v24  ;;  %2947 = vtanh.f32 %v1502_v56  ;;  %v1501_v62 = vmul.f32 %v2944_v42, %v2942_v5  ;;  %v4393_v42 = vld [vmem:[#allocation49_spill] sm:$0xff] }
 0x587   :  { %v1499_v29 = vmul.f32 %v2946_v4, %v4042_v0  ;;  %2949 = vrcp.f32 %v1480_v1 }
 0x588   :  { %2951 = vrcp.f32 %v1483_v23 }
 0x589   :  { %v1503_v8 = vadd.f32 %v1501_v62, %v1499_v29 }
 0x58b   :  { %2953 = vtanh.f32 %v1503_v8  ;;  %v4110_v31 = vsel %vm1521_vm12, %v1503_v8, %v4042_v0 }
 0x593   :  { %v2948_v30 = vpop.eup %2947 }
 0x594   :  { %v2950_v47 = vpop.eup %2949 }
 0x595   :  { %v2952_v3 = vpop.eup %2951  ;;  %v1506_v27 = vmul.f32 %v2950_v47, %v2948_v30  ;;  %v4395_v47 = vld [vmem:[#allocation53_spill] sm:$0xff] }
 0x597   :  { %v4114_v60 = vsel %vm1520_vm11, %v1506_v27, %v4046_v52  ;;  %v4392_v52 = vld [vmem:[#allocation47_spill] sm:$0xff] }
 0x598   :  { %v2954_v13 = vpop.eup %2953 }
 0x599   :  { %v1507_v24 = vmul.f32 %v2954_v13, %v2952_v3 }
 0x59b   :  { %v4117_v22 = vsel %vm1521_vm12, %v1507_v24, %v4049_v61 }
 0x59c   :  { %v1526_v5 = vpack.c.bf16 %v4117_v22, %v4114_v60 }
 0x59e   :  { %1560 = vmatmul.mubr.bf16.vlgmr.msra.gmra.mxu0 %v1526_v5  ;;  %1603 = vmatmul.mubr.bf16.vlgmr.msra.gmra.mxu1 %v1526_v5 }
 0x59f   :  { %1697 = vmatpush1.bf16.msra.mxu0 %v3853_v38  ;;  %1740 = vmatpush1.bf16.msra.mxu1 %v3856_v2 }
 0x5a0   :  { %1698 = vmatprep.subr.bf16.mxu0 %v3859_v49  ;;  %1741 = vmatprep.subr.bf16.mxu1 %v3862_v45 }
 0x5a1   :  { %1728 = vmatprep.mubr.bf16.mxu0 %v4365_v55  ;;  %1771 = vmatprep.mubr.bf16.mxu1 %v4365_v55 }
 0x5a3   :  { %1699 = vmatpush1.bf16.msra.mxu0 %v3867_v46  ;;  %1742 = vmatpush1.bf16.msra.mxu1 %v3870_v9 }
 0x5a4   :  { %1700 = vmatprep.subr.bf16.mxu0 %v3873_v10  ;;  %1743 = vmatprep.subr.bf16.mxu1 %v3876_v12 }
 0x5a7   :  { %1701 = vmatpush1.bf16.msra.mxu0 %v3879_v14  ;;  %1744 = vmatpush1.bf16.msra.mxu1 %v3882_v15 }
 0x5a8   :  { %1702 = vmatprep.subr.bf16.mxu0 %v3885_v16  ;;  %1745 = vmatprep.subr.bf16.mxu1 %v3968_v59 }
 0x5ab   :  { %1703 = vmatpush1.bf16.msra.mxu0 %v3889_v17  ;;  %1746 = vmatpush1.bf16.msra.mxu1 %v3972_v63 }
 0x5ac   :  { %1704 = vmatprep.subr.bf16.mxu0 %v3893_v18  ;;  %1747 = vmatprep.subr.bf16.mxu1 %v3976_v7 }
 0x5af   :  { %1705 = vmatpush1.bf16.msra.mxu0 %v3897_v19  ;;  %1748 = vmatpush1.bf16.msra.mxu1 %v3980_v32 }
 0x5b0   :  { %1706 = vmatprep.subr.bf16.mxu0 %v3901_v6  ;;  %1749 = vmatprep.subr.bf16.mxu1 %v3984_v33 }
 0x5b3   :  { %1707 = vmatpush1.bf16.msra.mxu0 %v3987_v34  ;;  %1750 = vmatpush1.bf16.msra.mxu1 %v3990_v35 }
 0x5b4   :  { %1708 = vmatprep.subr.bf16.mxu0 %v3993_v36  ;;  %1751 = vmatprep.subr.bf16.mxu1 %v3996_v37 }
 0x5b7   :  { %1709 = vmatpush1.bf16.msra.mxu0 %v3999_v40  ;;  %1752 = vmatpush1.bf16.msra.mxu1 %v4002_v43 }
 0x5b8   :  { %1710 = vmatprep.subr.bf16.mxu0 %v4005_v44  ;;  %1753 = vmatprep.subr.bf16.mxu1 %v4008_v11 }
 0x5bb   :  { %1711 = vmatpush1.bf16.msra.mxu0 %v4011_v20  ;;  %1754 = vmatpush1.bf16.msra.mxu1 %v4014_v21 }
 0x5bc   :  { %1865 = vmatprep.subr.bf16.mxu0 %v3915_v25  ;;  %1908 = vmatprep.subr.bf16.mxu1 %v3918_v26 }
 0x65e   :  { %v1561_v0 = vpop.f32.mrf.mxu0  ;;  %v1604_v4 = vpop.f32.mrf.mxu1 }
 0x65f   :  { %v1613_v61 = vadd.f32 %v1561_v0, %v4392_v52  ;;  %v4396_v52 = vld [vmem:[#allocation48_spill] sm:$0xff] }
 0x660   :  { %v1563_v41 = vpop.f32.mrf.mxu0  ;;  %v1606_v3 = vpop.f32.mrf.mxu1 }
 0x661   :  { %v1621_v56 = vadd.f32 %v1613_v61, %v3725_v48  ;;  %v1614_v1 = vadd.f32 %v1563_v41, %v4393_v42  ;;  %v1615_v61 = vadd.f32 %v1604_v4, %v4396_v52  ;;  %v4397_v41 = vld [vmem:[#allocation52_spill] sm:$0xff]  ;;  %v4398_v42 = vld [vmem:[#allocation50_spill] sm:$0xff] }
 0x662   :  { %v1565_v23 = vpop.f32.mrf.mxu0  ;;  %v1608_v0 = vpop.f32.mrf.mxu1 }
 0x663   :  { %v2573_v29 = vmul.f32 -1.442695, %v1621_v56  ;;  %v1622_v62 = vadd.f32 %v1614_v1, %v3730_v53  ;;  %v1617_v8 = vadd.f32 %v1565_v23, %v4394_v54  ;;  %v1619_v56 = vadd.f32 %v1608_v0, %v4397_v41 }
 0x664   :  { %v1567_v30 = vpop.f32.mrf.mxu0  ;;  %v1616_v1 = vadd.f32 %v1606_v3, %v4398_v42  ;;  %v1623_v23 = vadd.f32 %v1615_v61, %v3742_v58 }
 0x665   :  { %2955 = vpow2.f32 %v2573_v29  ;;  %v2574_v25 = vmul.f32 -1.442695, %v1622_v62  ;;  %v1618_v26 = vadd.f32 %v1567_v30, %v4395_v47  ;;  %v1625_v27 = vadd.f32 %v1617_v8, %v3725_v48  ;;  %v1610_v29 = vpop.f32.mrf.mxu1 }
 0x666   :  { %v1627_v62 = vadd.f32 %v1619_v56, %v3742_v58  ;;  %v1624_v8 = vadd.f32 %v1616_v1, %v3750_v57 }
 0x667   :  { %2957 = vpow2.f32 %v2574_v25  ;;  %v1626_v13 = vadd.f32 %v1618_v26, %v3730_v53  ;;  %v2576_v24 = vmul.f32 -1.442695, %v1625_v27  ;;  %v4399_v25 = vld [vmem:[#allocation54_spill] sm:$0xff]  ;;  %v2575_v27 = vmul.f32 -1.442695, %v1623_v23 }
 0x668   :  { %v1620_v47 = vadd.f32 %v1610_v29, %v4399_v25 }
 0x669   :  { %v2577_v5 = vmul.f32 -1.442695, %v1626_v13  ;;  %2959 = vpow2.f32 %v2576_v24  ;;  %v2578_v13 = vmul.f32 -1.442695, %v1627_v62 }
 0x66a   :  { %v1628_v3 = vadd.f32 %v1620_v47, %v3750_v57 }
 0x66b   :  { %2961 = vpow2.f32 %v2577_v5 }
 0x672   :  { %v2956_v54 = vpop.eup %2955 }
 0x673   :  { %v1647_v30 = vadd.f32 1.0, %v2956_v54  ;;  %v1685_v54 = vpop.permute.xlu0 %1684 }
 0x674   :  { %v2958_v26 = vpop.eup %2957  ;;  %vm1689_vm13 = vcmp.eq.s32.totalorder %v1685_v54, 1 }
 0x675   :  { %2963 = vrcp.f32 %v1647_v30  ;;  %v1648_v4 = vadd.f32 1.0, %v2958_v26 }
 0x676   :  { %2965 = vtanh.f32 %v1624_v8  ;;  %v2960_v24 = vpop.eup %2959 }
 0x677   :  { %2967 = vrcp.f32 %v1648_v4  ;;  %v1650_v5 = vadd.f32 1.0, %v2960_v24  ;;  %v1688_v24 = vpop.permute.xlu1 %1687 }
 0x678   :  { %2969 = vpow2.f32 %v2575_v27  ;;  %v2962_v0 = vpop.eup %2961  ;;  %vm1690_vm14 = vcmp.eq.s32.totalorder %v1688_v24, 1 }
 0x679   :  { %2971 = vpow2.f32 %v2578_v13  ;;  %v1651_v52 = vadd.f32 1.0, %v2962_v0 }
 0x67a   :  { %2973 = vrcp.f32 %v1650_v5 }
 0x67b   :  { %2975 = vtanh.f32 %v1628_v3 }
 0x67c   :  { %2977 = vrcp.f32 %v1651_v52 }
 0x682   :  { %v2964_v61 = vpop.eup %2963 }
 0x683   :  { %v2966_v41 = vpop.eup %2965 }
 0x684   :  { %v2968_v56 = vpop.eup %2967  ;;  %v1669_v23 = vmul.f32 %v2966_v41, %v2964_v61 }
 0x685   :  { %v2970_v42 = vpop.eup %2969  ;;  %v1667_v1 = vmul.f32 %v2968_v56, %v4106_v28 }
 0x686   :  { %v2972_v29 = vpop.eup %2971  ;;  %v1649_v25 = vadd.f32 1.0, %v2970_v42 }
 0x687   :  { %v2974_v62 = vpop.eup %2973  ;;  %v1671_v8 = vadd.f32 %v1669_v23, %v1667_v1  ;;  %v1652_v26 = vadd.f32 1.0, %v2972_v29 }
 0x688   :  { %v2976_v30 = vpop.eup %2975 }
 0x689   :  { %v2978_v47 = vpop.eup %2977  ;;  %v4174_v27 = vsel %vm1689_vm13, %v1671_v8, %v4106_v28  ;;  %2979 = vtanh.f32 %v1671_v8  ;;  %v1670_v13 = vmul.f32 %v2976_v30, %v2974_v62  ;;  %v4407_v30 = vld [vmem:[#allocation62_spill] sm:$0xff] }
 0x68a   :  { %v1668_v4 = vmul.f32 %v2978_v47, %v4110_v31  ;;  %2981 = vrcp.f32 %v1649_v25 }
 0x68b   :  { %2983 = vrcp.f32 %v1652_v26 }
 0x68c   :  { %v1672_v3 = vadd.f32 %v1670_v13, %v1668_v4 }
 0x68e   :  { %2985 = vtanh.f32 %v1672_v3  ;;  %v4178_v5 = vsel %vm1690_vm14, %v1672_v3, %v4110_v31 }
 0x696   :  { %v2980_v0 = vpop.eup %2979 }
 0x697   :  { %v2982_v52 = vpop.eup %2981 }
 0x698   :  { %v2984_v61 = vpop.eup %2983  ;;  %v1675_v41 = vmul.f32 %v2982_v52, %v2980_v0 }
 0x69a   :  { %v4182_v42 = vsel %vm1689_vm13, %v1675_v41, %v4114_v60 }
 0x69b   :  { %v2986_v56 = vpop.eup %2985 }
 0x69c   :  { %v1676_v28 = vmul.f32 %v2986_v56, %v2984_v61 }
 0x69e   :  { %v4185_v1 = vsel %vm1690_vm14, %v1676_v28, %v4117_v22 }
 0x69f   :  { %v1695_v23 = vpack.c.bf16 %v4185_v1, %v4182_v42 }
 0x6a1   :  { %1729 = vmatmul.mubr.bf16.vlgmr.msra.gmra.mxu0 %v1695_v23  ;;  %1772 = vmatmul.mubr.bf16.vlgmr.msra.gmra.mxu1 %v1695_v23 }
 0x6a2   :  { %1866 = vmatpush1.bf16.msra.mxu0 %v3853_v38  ;;  %1909 = vmatpush1.bf16.msra.mxu1 %v3856_v2  ;;  %v2774_v38 = vld [vmem:[#allocation10 + $0x4] ss:$16 sps:$4 sm:$0xff]   ;;  %v2778_v2 = vld [vmem:[#allocation10 + $0xc] ss:$16 sps:$4 sm:$0xff]  }
 0x6a3   :  { %1867 = vmatprep.subr.bf16.mxu0 %v3859_v49  ;;  %1910 = vmatprep.subr.bf16.mxu1 %v3862_v45  ;;  %v4400_v45 = vld [vmem:[#allocation55_spill] sm:$0xff] }
 0x6a4   :  { %1897 = vmatprep.mubr.bf16.mxu0 %v4365_v55  ;;  %1940 = vmatprep.mubr.bf16.mxu1 %v4365_v55 }
 0x6a6   :  { %1868 = vmatpush1.bf16.msra.mxu0 %v3867_v46  ;;  %1911 = vmatpush1.bf16.msra.mxu1 %v3870_v9 }
 0x6a7   :  { %1869 = vmatprep.subr.bf16.mxu0 %v3873_v10  ;;  %1912 = vmatprep.subr.bf16.mxu1 %v3876_v12  ;;  %v4401_v12 = vld [vmem:[#allocation57_spill] sm:$0xff] }
 0x6aa   :  { %1870 = vmatpush1.bf16.msra.mxu0 %v3879_v14  ;;  %1913 = vmatpush1.bf16.msra.mxu1 %v3882_v15 }
 0x6ab   :  { %1871 = vmatprep.subr.bf16.mxu0 %v3885_v16  ;;  %1914 = vmatprep.subr.bf16.mxu1 %v3968_v59 }
 0x6ae   :  { %1872 = vmatpush1.bf16.msra.mxu0 %v3889_v17  ;;  %1915 = vmatpush1.bf16.msra.mxu1 %v3972_v63 }
 0x6af   :  { %1873 = vmatprep.subr.bf16.mxu0 %v3893_v18  ;;  %1916 = vmatprep.subr.bf16.mxu1 %v3976_v7  ;;  %v4403_v7 = vld [vmem:[#allocation61_spill] sm:$0xff] }
 0x6b2   :  { %1874 = vmatpush1.bf16.msra.mxu0 %v3897_v19  ;;  %1917 = vmatpush1.bf16.msra.mxu1 %v3980_v32  ;;  %v4402_v19 = vld [vmem:[#allocation59_spill] sm:$0xff] }
 0x6b3   :  { %1875 = vmatprep.subr.bf16.mxu0 %v3901_v6  ;;  %1918 = vmatprep.subr.bf16.mxu1 %v3984_v33 }
 0x6b6   :  { %1876 = vmatpush1.bf16.msra.mxu0 %v3987_v34  ;;  %1919 = vmatpush1.bf16.msra.mxu1 %v3990_v35 }
 0x6b7   :  { %1877 = vmatprep.subr.bf16.mxu0 %v3993_v36  ;;  %1920 = vmatprep.subr.bf16.mxu1 %v3996_v37 }
 0x6ba   :  { %1878 = vmatpush1.bf16.msra.mxu0 %v3999_v40  ;;  %1921 = vmatpush1.bf16.msra.mxu1 %v4002_v43  ;;  %v4404_v43 = vld [vmem:[#allocation56_spill] sm:$0xff] }
 0x6bb   :  { %1879 = vmatprep.subr.bf16.mxu0 %v4005_v44  ;;  %1922 = vmatprep.subr.bf16.mxu1 %v4008_v11  ;;  %v4405_v11 = vld [vmem:[#allocation60_spill] sm:$0xff] }
 0x6be   :  { %1880 = vmatpush1.bf16.msra.mxu0 %v4011_v20  ;;  %1923 = vmatpush1.bf16.msra.mxu1 %v4014_v21  ;;  %v4406_v21 = vld [vmem:[#allocation58_spill] sm:$0xff] }
 0x6bf   :  { %2110 = vmatprep.subr.bf16.mxu0 %v2774_v38  ;;  %2153 = vmatprep.subr.bf16.mxu1 %v2778_v2 }
 0x761   :  { %v1730_v49 = vpop.f32.mrf.mxu0  ;;  %v1773_v15 = vpop.f32.mrf.mxu1 }
 0x762   :  { %v1782_v46 = vadd.f32 %v1730_v49, %v4400_v45  ;;  %v1784_v44 = vadd.f32 %v1773_v15, %v4404_v43  ;;  %v2776_v43 = vld [vmem:[#allocation10 + $0x8] ss:$16 sps:$4 sm:$0xff]  }
 0x763   :  { %v1732_v9 = vpop.f32.mrf.mxu0  ;;  %v1775_v33 = vpop.f32.mrf.mxu1 }
 0x764   :  { %v1790_v10 = vadd.f32 %v1782_v46, %v3725_v48  ;;  %v1783_v14 = vadd.f32 %v1732_v9, %v4401_v12  ;;  %v1785_v31 = vadd.f32 %v1775_v33, %v4406_v21  ;;  %v1792_v60 = vadd.f32 %v1784_v44, %v3742_v58  ;;  %v1854_v46 = vpop.permute.xlu0 %1853  ;;  %v2780_v44 = vld [vmem:[#allocation12 + $0x30] sm:$0xff]   ;;  %v2784_v21 = vld [vmem:[#allocation12 + $0x20] sm:$0xff]  }
 0x765   :  { %v1734_v16 = vpop.f32.mrf.mxu0  ;;  %v1777_v40 = vpop.f32.mrf.mxu1  ;;  %vm1858_vm15 = vcmp.eq.s32.totalorder %v1854_v46, 1 }
 0x766   :  { %v2581_v17 = vmul.f32 -1.442695, %v1790_v10  ;;  %v1791_v18 = vadd.f32 %v1783_v14, %v3730_v53  ;;  %v1786_v6 = vadd.f32 %v1734_v16, %v4402_v19  ;;  %v1788_v20 = vadd.f32 %v1777_v40, %v4405_v11  ;;  %v1857_v19 = vpop.permute.xlu1 %1856  ;;  %v2781_v11 = vld [vmem:[#allocation13 + $0x38] sm:$0xff]  }
 0x767   :  { %v1736_v59 = vpop.f32.mrf.mxu0  ;;  %v1779_v22 = vpop.f32.mrf.mxu1  ;;  %v1793_v54 = vadd.f32 %v1785_v31, %v3750_v57  ;;  %v2583_v26 = vmul.f32 -1.442695, %v1792_v60  ;;  %vm1859_vm1 = vcmp.eq.s32.totalorder %v1857_v19, 1  ;;  %v2785_v31 = vld [vmem:[#allocation13 + $0x28] sm:$0xff]   ;;  %v2786_v60 = vld [vmem:[#allocation12 + $0x18] sm:$0xff]  }
 0x768   :  { %2987 = vpow2.f32 %v2581_v17  ;;  %v2582_v63 = vmul.f32 -1.442695, %v1791_v18  ;;  %v1787_v32 = vadd.f32 %v1736_v59, %v4403_v7  ;;  %v1794_v34 = vadd.f32 %v1786_v6, %v3725_v48  ;;  %v4414_v19 = vld [vmem:[#allocation64_spill] sm:$0xff] }
 0x769   :  { %v1796_v29 = vadd.f32 %v1788_v20, %v3742_v58  ;;  %v1789_v25 = vadd.f32 %v1779_v22, %v4407_v30  ;;  %v2783_v20 = vld [vmem:[#allocation13 + $0x30] sm:$0xff]   ;;  %v2787_v22 = vld [vmem:[#allocation13 + $0x20] sm:$0xff]  }
 0x76a   :  { %2989 = vpow2.f32 %v2582_v63  ;;  %v1795_v35 = vadd.f32 %v1787_v32, %v3730_v53  ;;  %v2584_v36 = vmul.f32 -1.442695, %v1794_v34  ;;  %v2792_v30 = vld [vmem:[#allocation12] sm:$0xff]  }
 0x76b   :  { %v2586_v13 = vmul.f32 -1.442695, %v1796_v29  ;;  %v1797_v3 = vadd.f32 %v1789_v25, %v3750_v57  ;;  %v2788_v29 = vld [vmem:[#allocation12 + $0x10] sm:$0xff]   ;;  %v2793_v25 = vld [vmem:[#allocation13 + $0x8] sm:$0xff]  }
 0x76c   :  { %v2585_v37 = vmul.f32 -1.442695, %v1795_v35  ;;  %2991 = vpow2.f32 %v2584_v36 }
 0x76e   :  { %2993 = vpow2.f32 %v2585_v37  ;;  %v2772_v37 = vld [vmem:[#allocation10] ss:$16 sps:$4 sm:$0xff]  }
 0x775   :  { %v2988_v62 = vpop.eup %2987 }
 0x776   :  { %v1816_v8 = vadd.f32 1.0, %v2988_v62  ;;  %v2789_v62 = vld [vmem:[#allocation13 + $0x18] sm:$0xff]  }
 0x777   :  { %v2990_v47 = vpop.eup %2989 }
 0x778   :  { %2995 = vrcp.f32 %v1816_v8  ;;  %v1817_v4 = vadd.f32 1.0, %v2990_v47  ;;  %v2791_v8 = vld [vmem:[#allocation13 + $0x10] sm:$0xff]   ;;  %v2794_v47 = vld [vmem:[#allocation13] sm:$0xff]  }
 0x779   :  { %2997 = vtanh.f32 %v1793_v54  ;;  %v2992_v24 = vpop.eup %2991  ;;  %v2790_v54 = vld [vmem:[#allocation12 + $0x8] sm:$0xff]  }
 0x77a   :  { %2999 = vrcp.f32 %v1817_v4  ;;  %v1819_v0 = vadd.f32 1.0, %v2992_v24 }
 0x77b   :  { %3001 = vpow2.f32 %v2583_v26  ;;  %v2994_v52 = vpop.eup %2993 }
 0x77c   :  { %3003 = vpow2.f32 %v2586_v13  ;;  %v1820_v61 = vadd.f32 1.0, %v2994_v52  ;;  %v4408_v13 = vld [vmem:[#allocation63_spill] sm:$0xff] }
 0x77d   :  { %3005 = vrcp.f32 %v1819_v0  ;;  %v2046_v52 = vld [vmem:[%s4306_s7] sm:$0xf] }
 0x77e   :  { %3007 = vtanh.f32 %v1797_v3 }
 0x77f   :  { %3009 = vrcp.f32 %v1820_v61 }
 0x785   :  { %v2996_v41 = vpop.eup %2995 }
 0x786   :  { %v2998_v56 = vpop.eup %2997 }
 0x787   :  { %v3000_v28 = vpop.eup %2999  ;;  %v1838_v2 = vmul.f32 %v2998_v56, %v2996_v41  ;;  %v4409_v41 = vld [vmem:[#allocation65_spill] sm:$0xff] }
 0x788   :  { %v3002_v23 = vpop.eup %3001  ;;  %v1836_v38 = vmul.f32 %v3000_v28, %v4174_v27 }
 0x789   :  { %v3004_v49 = vpop.eup %3003  ;;  %v1818_v12 = vadd.f32 1.0, %v3002_v23 }
 0x78a   :  { %v3006_v45 = vpop.eup %3005  ;;  %v1840_v9 = vadd.f32 %v1838_v2, %v1836_v38  ;;  %v1821_v15 = vadd.f32 1.0, %v3004_v49  ;;  %v4410_v2 = vsub.s32 0, %v3700_v50 }
 0x78b   :  { %v3008_v10 = vpop.eup %3007 }
 0x78c   :  { %v3010_v14 = vpop.eup %3009  ;;  %v4240_v16 = vsel %vm1858_vm15, %v1840_v9, %v4174_v27  ;;  %3011 = vtanh.f32 %v1840_v9  ;;  %v1839_v18 = vmul.f32 %v3008_v10, %v3006_v45  ;;  %v2051_v49 = vrot.slane %v2046_v52, %v4410_v2  ;;  %v4411_v45 = vld [vmem:[#allocation67_spill] sm:$0xff] }
 0x78d   :  { %v1837_v17 = vmul.f32 %v3010_v14, %v4178_v5  ;;  %3013 = vrcp.f32 %v1818_v12  ;;  %v4412_v14 = vld [vmem:[#allocation69_spill] sm:$0xff] }
 0x78e   :  { %3015 = vrcp.f32 %v1821_v15 }
 0x78f   :  { %v1841_v6 = vadd.f32 %v1839_v18, %v1837_v17  ;;  %v4413_v17 = vsub.s32 1, %v3700_v50 }
 0x791   :  { %3017 = vtanh.f32 %v1841_v6  ;;  %v4244_v59 = vsel %vm1859_vm1, %v1841_v6, %v4178_v5  ;;  %v2775_v5 = vld [vmem:[%s4301_s2] sm:$0xff]   ;;  %v2055_v18 = vrot.slane %v2046_v52, %v4413_v17 }
 0x799   :  { %v3012_v63 = vpop.eup %3011 }
 0x79a   :  { %v3014_v7 = vpop.eup %3013 }
 0x79b   :  { %v3016_v32 = vpop.eup %3015  ;;  %v1844_v33 = vmul.f32 %v3014_v7, %v3012_v63 }
 0x79d   :  { %v4248_v35 = vsel %vm1858_vm15, %v1844_v33, %v4182_v42  ;;  %v2779_v42 = vld [vmem:[#allocation12 + $0x38] sm:$0xff]  }
 0x79e   :  { %v3018_v34 = vpop.eup %3017 }
 0x79f   :  { %v1845_v27 = vmul.f32 %v3018_v34, %v3016_v32 }
 0x7a1   :  { %v4251_v36 = vsel %vm1859_vm1, %v1845_v27, %v4185_v1  ;;  %v3277_v1 = vmov 0.0  }
 0x7a2   :  { %v1864_v40 = vpack.c.bf16 %v4251_v36, %v4248_v35 }
 0x7a4   :  { %1898 = vmatmul.mubr.bf16.vlgmr.msra.gmra.mxu0 %v1864_v40  ;;  %1941 = vmatmul.mubr.bf16.vlgmr.msra.gmra.mxu1 %v1864_v40 }
 0x7a5   :  { %2111 = vmatpush1.bf16.msra.mxu0 %v2772_v37  ;;  %2128 = vmatprep.mubr.bf16.mxu0 %v4365_v55 }
 0x7a6   :  { %2154 = vmatpush1.bf16.msra.mxu1 %v2776_v43  ;;  %2171 = vmatprep.mubr.bf16.mxu1 %v4365_v55  ;;  %v2782_v55 = vld [vmem:[#allocation12 + $0x28] sm:$0xff]  }
 0x7a7   :  { %2671 = vmatprep.subr.bf16.mxu1 %v3277_v1  ;;  %2651 = vmatprep.subr.bf16.mxu0 %v3277_v1 }
 0x7ac   :  { %2602 = vmatmul.mubr.msk.bf16.vlgmr.msra.gmra.mxu0 %vm210_vm0, %v2775_v5  ;;  %2603 = vmatmul.mubr.msk.bf16.vlgmr.msra.gmra.mxu1 %vm210_vm0, %v2775_v5  ;;  %vm3278_vm0 = vmmov 0  }
 0x7ad   :  { %2672 = vmatpush3.bf16.msra.mxu1 %v2779_v42  ;;  %2652 = vmatpush3.bf16.msra.mxu0 %v2781_v11 }
 0x7ae   :  { %2673 = vmatprep.subr.bf16.mxu1 %v3277_v1  ;;  %2653 = vmatprep.subr.bf16.mxu0 %v3277_v1 }
 0x7af   :  { %2687 = vmatprep.mubr.msk.bf16.mxu1 %vm3278_vm0, %v3277_v1  ;;  %2667 = vmatprep.mubr.msk.bf16.mxu0 %vm3278_vm0, %v3277_v1 }
 0x7b1   :  { %2674 = vmatpush3.bf16.msra.mxu1 %v2780_v44  ;;  %2654 = vmatpush3.bf16.msra.mxu0 %v2783_v20  ;;  %v4416_v20 = vld [vmem:[#allocation66_spill] sm:$0xff] }
 0x7b2   :  { %2675 = vmatprep.subr.bf16.mxu1 %v3277_v1  ;;  %2655 = vmatprep.subr.bf16.mxu0 %v3277_v1 }
 0x7b5   :  { %2676 = vmatpush3.bf16.msra.mxu1 %v2782_v55  ;;  %2656 = vmatpush3.bf16.msra.mxu0 %v2785_v31 }
 0x7b6   :  { %2677 = vmatprep.subr.bf16.mxu1 %v3277_v1  ;;  %2657 = vmatprep.subr.bf16.mxu0 %v3277_v1 }
 0x7b9   :  { %2678 = vmatpush3.bf16.msra.mxu1 %v2784_v21  ;;  %2658 = vmatpush3.bf16.msra.mxu0 %v2787_v22 }
 0x7ba   :  { %2679 = vmatprep.subr.bf16.mxu1 %v3277_v1  ;;  %2659 = vmatprep.subr.bf16.mxu0 %v3277_v1 }
 0x7bd   :  { %2680 = vmatpush3.bf16.msra.mxu1 %v2786_v60  ;;  %2660 = vmatpush3.bf16.msra.mxu0 %v2789_v62 }
 0x7be   :  { %2681 = vmatprep.subr.bf16.mxu1 %v3277_v1  ;;  %2661 = vmatprep.subr.bf16.mxu0 %v3277_v1 }
 0x7c1   :  { %2682 = vmatpush3.bf16.msra.mxu1 %v2788_v29  ;;  %2662 = vmatpush3.bf16.msra.mxu0 %v2791_v8  ;;  %v2059_v29 = vrot.slane %v2046_v52, %v767_v39 }
 0x7c2   :  { %2683 = vmatprep.subr.bf16.mxu1 %v3277_v1  ;;  %2663 = vmatprep.subr.bf16.mxu0 %v3277_v1 }
 0x7c5   :  { %2684 = vmatpush3.bf16.msra.mxu1 %v2790_v54  ;;  %2664 = vmatpush3.bf16.msra.mxu0 %v2793_v25 }
 0x7c6   :  { %2685 = vmatprep.subr.bf16.mxu1 %v3277_v1  ;;  %2665 = vmatprep.subr.bf16.mxu0 %v3277_v1  ;;  %v4415_v1 = vld [vmem:[#allocation68_spill] sm:$0xff] }
 0x7c9   :  { %2686 = vmatpush3.bf16.msra.mxu1 %v2792_v30  ;;  %2666 = vmatpush3.bf16.msra.mxu0 %v2794_v47 }
 0x864   :  { %v1899_v26 = vpop.f32.mrf.mxu0  ;;  %v1942_v4 = vpop.f32.mrf.mxu1 }
 0x865   :  { %v1951_v24 = vadd.f32 %v1899_v26, %v4408_v13  ;;  %v1953_v6 = vadd.f32 %v1942_v4, %v4414_v19 }
 0x866   :  { %v1901_v3 = vpop.f32.mrf.mxu0  ;;  %v1944_v0 = vpop.f32.mrf.mxu1 }
 0x867   :  { %v1959_v61 = vadd.f32 %v1951_v24, %v3725_v48  ;;  %v1952_v56 = vadd.f32 %v1901_v3, %v4409_v41  ;;  %v1961_v42 = vadd.f32 %v1953_v6, %v3742_v58  ;;  %v2063_v24 = vrot.slane %v2046_v52, %v771_v51 }
 0x868   :  { %v1903_v28 = vpop.f32.mrf.mxu0  ;;  %v1946_v9 = vpop.f32.mrf.mxu1 }
 0x869   :  { %v2589_v23 = vmul.f32 -1.442695, %v1959_v61  ;;  %v1960_v38 = vadd.f32 %v1952_v56, %v3730_v53  ;;  %v1955_v46 = vadd.f32 %v1903_v28, %v4411_v45  ;;  %v1957_v44 = vadd.f32 %v1946_v9, %v4415_v1 }
 0x86a   :  { %v1905_v10 = vpop.f32.mrf.mxu0  ;;  %v1948_v27 = vpop.f32.mrf.mxu1  ;;  %v2591_v8 = vmul.f32 -1.442695, %v1961_v42 }
 0x86b   :  { %3019 = vpow2.f32 %v2589_v23  ;;  %v2590_v12 = vmul.f32 -1.442695, %v1960_v38  ;;  %v1956_v15 = vadd.f32 %v1905_v10, %v4412_v14  ;;  %v1963_v63 = vadd.f32 %v1955_v46, %v3725_v48 }
 0x86c   :  { %v2130_v7 = vpop.f32.mrf.mxu0  ;;  %v2173_v55 = vpop.f32.mrf.mxu1  ;;  %v1954_v48 = vadd.f32 %v1944_v0, %v4416_v20  ;;  %v1965_v30 = vadd.f32 %v1957_v44, %v3742_v58 }
 0x86d   :  { %3021 = vpow2.f32 %v2590_v12  ;;  %v1964_v32 = vadd.f32 %v1956_v15, %v3730_v53  ;;  %v2131_v33 = vadd.f32 %v2130_v7, %v2051_v49  ;;  %v2592_v34 = vmul.f32 -1.442695, %v1963_v63  ;;  %v4417_v53 = vld [vmem:[#allocation70_spill] sm:$0xff] }
 0x86e   :  { %v2132_v37 = vpop.f32.mrf.mxu0  ;;  %v1958_v60 = vadd.f32 %v1948_v27, %v4417_v53  ;;  %v2175_v25 = vpop.f32.mrf.mxu1  ;;  %v1962_v47 = vadd.f32 %v1954_v48, %v3750_v57  ;;  %v2174_v13 = vadd.f32 %v2173_v55, %v2059_v29  ;;  %v2594_v3 = vmul.f32 -1.442695, %v1965_v30 }
 0x86f   :  { %v2593_v40 = vmul.f32 -1.442695, %v1964_v32  ;;  %v2604_v43 = vmul.f32 -1.442695, %v2131_v33  ;;  %v2133_v5 = vadd.f32 %v2132_v37, %v2055_v18  ;;  %3023 = vpow2.f32 %v2592_v34 }
 0x870   :  { %v2134_v11 = vpop.f32.mrf.mxu0  ;;  %v1966_v4 = vadd.f32 %v1958_v60, %v3750_v57  ;;  %v2177_v0 = vpop.f32.mrf.mxu1  ;;  %v2606_v56 = vmul.f32 -1.442695, %v2174_v13  ;;  %v2176_v23 = vadd.f32 %v2175_v25, %v2063_v24 }
 0x871   :  { %v2605_v21 = vmul.f32 -1.442695, %v2133_v5  ;;  %v2135_v31 = vadd.f32 %v2134_v11, %v2051_v49  ;;  %3025 = vpow2.f32 %v2593_v40  ;;  %v2178_v58 = vadd.f32 %v2177_v0, %v2059_v29  ;;  %v2026_v13 = vpop.permute.xlu1 %2025 }
 0x872   :  { %v2136_v22 = vpop.f32.mrf.mxu0  ;;  %3027 = vpow2.f32 %v2604_v43  ;;  %v2179_v51 = vpop.f32.mrf.mxu1  ;;  %vm2028_vm3 = vcmp.eq.s32.totalorder %v2026_v13, 1 }
 0x873   :  { %v2607_v62 = vmul.f32 -1.442695, %v2135_v31  ;;  %v2137_v54 = vadd.f32 %v2136_v22, %v2055_v18  ;;  %3029 = vpow2.f32 %v2605_v21  ;;  %v2609_v38 = vmul.f32 -1.442695, %v2178_v58 }
 0x874   :  { %v2180_v12 = vadd.f32 %v2179_v51, %v2063_v24 }
 0x875   :  { %3031 = vpow2.f32 %v2607_v62  ;;  %v2608_v26 = vmul.f32 -1.442695, %v2137_v54 }
 0x877   :  { %3033 = vpow2.f32 %v2608_v26 }
 0x878   :  { %v3020_v39 = vpop.eup %3019  ;;  %3035 = vpow2.f32 %v2591_v8 }
 0x879   :  { %v1985_v61 = vadd.f32 1.0, %v3020_v39  ;;  %3037 = vtanh.f32 %v1962_v47 }
 0x87a   :  { %v3022_v41 = vpop.eup %3021  ;;  %3039 = vtanh.f32 %v1966_v4  ;;  %v2023_v4 = vpop.permute.xlu0 %2022 }
 0x87b   :  { %3041 = vrcp.f32 %v1985_v61  ;;  %v1986_v28 = vadd.f32 1.0, %v3022_v41  ;;  %vm2027_vm2 = vcmp.eq.s32.totalorder %v2023_v4, 1 }
 0x87c   :  { %3043 = vpow2.f32 %v2594_v3  ;;  %v3024_v57 = vpop.eup %3023 }
 0x87d   :  { %3045 = vrcp.f32 %v1986_v28  ;;  %v1988_v2 = vadd.f32 1.0, %v3024_v57 }
 0x87e   :  { %3047 = vpow2.f32 %v2606_v56  ;;  %v3026_v50 = vpop.eup %3025 }
 0x87f   :  { %3049 = vtanh.f32 %v2176_v23  ;;  %v3028_v52 = vpop.eup %3027  ;;  %v1989_v49 = vadd.f32 1.0, %v3026_v50 }
 0x880   :  { %3051 = vrcp.f32 %v1988_v2  ;;  %v3030_v45 = vpop.eup %3029  ;;  %v2200_v46 = vadd.f32 1.0, %v3028_v52 }
 0x881   :  { %3053 = vpow2.f32 %v2609_v38  ;;  %v2201_v10 = vadd.f32 1.0, %v3030_v45  ;;  %v2626_v45 = vld [vmem:[%s4309_s10] ss:$0 sm:$0xff] }
 0x882   :  { %v3032_v9 = vpop.eup %3031  ;;  %3055 = vrcp.f32 %v1989_v49 }
 0x883   :  { %3057 = vrcp.f32 %v2200_v46  ;;  %v2203_v14 = vadd.f32 1.0, %v3032_v9 }
 0x884   :  { %v3034_v15 = vpop.eup %3033  ;;  %3059 = vrcp.f32 %v2201_v10 }
 0x885   :  { %v3036_v17 = vpop.eup %3035  ;;  %3061 = vrcp.f32 %v2203_v14  ;;  %v2204_v18 = vadd.f32 1.0, %v3034_v15 }
 0x886   :  { %v3038_v19 = vpop.eup %3037  ;;  %3063 = vtanh.f32 %v2180_v12  ;;  %v1987_v43 = vadd.f32 1.0, %v3036_v17 }
 0x887   :  { %v3040_v6 = vpop.eup %3039  ;;  %3065 = vrcp.f32 %v2204_v18 }
 0x888   :  { %v3042_v63 = vpop.eup %3041 }
 0x889   :  { %v3044_v7 = vpop.eup %3043  ;;  %v2007_v27 = vmul.f32 %v3042_v63, %v3038_v19 }
 0x88a   :  { %v3046_v32 = vpop.eup %3045  ;;  %v1990_v44 = vadd.f32 1.0, %v3044_v7 }
 0x88b   :  { %v3048_v33 = vpop.eup %3047  ;;  %v2005_v34 = vmul.f32 %v3046_v32, %v4240_v16 }
 0x88c   :  { %v3050_v37 = vpop.eup %3049  ;;  %v2202_v60 = vadd.f32 1.0, %v3048_v33 }
 0x88d   :  { %v3052_v40 = vpop.eup %3051  ;;  %v2009_v5 = vadd.f32 %v2007_v27, %v2005_v34 }
 0x88e   :  { %v3054_v42 = vpop.eup %3053  ;;  %v2008_v20 = vmul.f32 %v3052_v40, %v3040_v6 }
 0x88f   :  { %v3056_v1 = vpop.eup %3055  ;;  %3067 = vtanh.f32 %v2009_v5  ;;  %v2205_v54 = vadd.f32 1.0, %v3054_v42 }
 0x890   :  { %v3058_v11 = vpop.eup %3057  ;;  %v2006_v55 = vmul.f32 %v3056_v1, %v4244_v59  ;;  %3069 = vrcp.f32 %v1987_v43 }
 0x891   :  { %v3060_v48 = vpop.eup %3059  ;;  %v2222_v16 = vmul.f32 %v3058_v11, %v3050_v37  ;;  %3071 = vrcp.f32 %v1990_v44 }
 0x892   :  { %v3062_v21 = vpop.eup %3061  ;;  %v2010_v31 = vadd.f32 %v2008_v20, %v2006_v55  ;;  %v2220_v53 = vmul.f32 0.0, %v3060_v48 }
 0x893   :  { %v3064_v22 = vpop.eup %3063 }
 0x894   :  { %v3066_v29 = vpop.eup %3065  ;;  %3073 = vtanh.f32 %v2010_v31  ;;  %v2224_v62 = vadd.f32 %v2222_v16, %v2220_v53  ;;  %v2223_v30 = vmul.f32 %v3064_v22, %v3062_v21 }
 0x895   :  { %v2221_v8 = vmul.f32 0.0, %v3066_v29  ;;  %3075 = vrcp.f32 %v2202_v60 }
 0x896   :  { %3077 = vtanh.f32 %v2224_v62 }
 0x897   :  { %v2225_v25 = vadd.f32 %v2223_v30, %v2221_v8  ;;  %3079 = vrcp.f32 %v2205_v54 }
 0x899   :  { %3081 = vtanh.f32 %v2225_v25 }
 0x89c   :  { %v3068_v59 = vpop.eup %3067 }
 0x89d   :  { %v3070_v47 = vpop.eup %3069 }
 0x89e   :  { %v3072_v26 = vpop.eup %3071  ;;  %v2013_v24 = vmul.f32 %v3070_v47, %v3068_v59 }
 0x8a0   :  { %v2029_v58 = vsel %vm2027_vm2, %v2013_v24, %v4248_v35 }
 0x8a1   :  { %v3074_v39 = vpop.eup %3073 }
 0x8a2   :  { %v2014_v3 = vmul.f32 %v3074_v39, %v3072_v26  ;;  %v3076_v0 = vpop.eup %3075 }
 0x8a3   :  { %v3078_v61 = vpop.eup %3077 }
 0x8a4   :  { %v2030_v41 = vsel %vm2028_vm3, %v2014_v3, %v4251_v36  ;;  %v3080_v56 = vpop.eup %3079  ;;  %v2228_v57 = vmul.f32 %v3078_v61, %v3076_v0 }
 0x8a5   :  { %v2230_v28 = vpack.c.bf16 %v2030_v41, %v2029_v58 }
 0x8a6   :  { %v3082_v23 = vpop.eup %3081 }
 0x8a7   :  { %2688 = vmatmul.mubr.bf16.vlgmr.msra.gmra.mxu1 %v2230_v28  ;;  %v2229_v38 = vmul.f32 %v3082_v23, %v3080_v56 }
 0x8a9   :  { %v2247_v2 = vpack.c.bf16 %v2229_v38, %v2228_v57 }
 0x8ab   :  { %2668 = vmatmul.mubr.bf16.vlgmr.msra.gmra.mxu0 %v2247_v2 }
 0x967   :  { %v2435_v50 = vpop.f32.mrf.mxu1 }
 0x969   :  { %v2689_v51 = vpop.f32.mrf.mxu1 }
 0x96b   :  { %v2438_v52 = vpop.f32.mrf.mxu1  ;;  %v2346_v49 = vpop.f32.mrf.mxu0 }
 0x96c   :  { %v2436_v46 = vadd.f32 %v2435_v50, %v2346_v49 }
 0x96d   :  { %v2690_v35 = vpop.f32.mrf.mxu1  ;;  %v2669_v9 = vpop.f32.mrf.mxu0 }
 0x96e   :  { %v2449_v36 = vadd.f32 %v2626_v45, %v2436_v46 }
 0x96f   :  { %v2349_v10 = vpop.f32.mrf.mxu0 }
 0x970   :  { %2451 = vst [vmem:[#allocation15] sm:$0xff] %v2449_v36  ;;  %v2439_v12 = vadd.f32 %v2438_v52, %v2349_v10 }
 0x971   :  { %v2670_v14 = vpop.f32.mrf.mxu0 }
 0x972   :  { %v2450_v15 = vadd.f32 %v2626_v45, %v2439_v12 }
 0x974   :  { %2452 = vst [vmem:[#allocation15 + $0x8] sm:$0xff] %v2450_v15 }
 0x975   :  { %3246 = shalt.err (!%p3243_p6)
}
 0x976   :  { %s3280_s10 = smov 128   ;;  %s3281_s17 = smov 8  }
 0x977   :  { %2464 = dma.vmem_to_hbm [thread:$0]  %s2459_s15, 256, %s4310_s11, [#allocation6], %s3280_s10, %s3280_s10, %s3281_s17  }
 0x978   :  { %3263 = dma.done.wait [#allocation6], 256  }
 0x979   :  { %3264 = vsyncadd [#allocation6], 4294967040 }
 0x97a   :  { %2468 = vsyncpa [#allocation5], 1 }
 0x97b   :  { %2469 = vsyncpa [#allocation8], 1 }
 0x97c   :  { %2470 = vsyncpa [#allocation11], 1 }
 0x97d   :  { %2471 = vsyncpa [#allocation14], 1 }
 0x97e   :  { %2472 = vsyncpa [#allocation6], 1 }

</bundles_post_ra>
